<compile_context>
chip_gen: v6e
topology: v6e:2x2x1
jax: 0.10.0
libtpu: 0.0.40
codegen_flags: <defaults>
</compile_context>

<pallas_src>
import functools

import jax
import jax.numpy as jnp
from jax.experimental import pallas as pl
from jax.experimental.pallas import tpu as pltpu


def _round_up(x, m):
    return (x + m - 1) // m * m


def _sigmoid(x):
    # sigmoid(x) = 0.5*tanh(0.5*x) + 0.5 : one EUP op (tanh) instead of
    # exp + divide; exact up to fp rounding.
    return 0.5 * jnp.tanh(0.5 * x) + 0.5


def _lstm_kernel(gx_ref, h0_ref, c0_ref, whh_hbm,
                 out_ref, cn_ref,
                 h_scr, c_scr, whh_scr,
                 *, t_real, t_block, unroll):
    """One grid step = `t_block` timesteps of one batch block.

    gx_ref : (Tb, Bb, 4*Hp) f32  precomputed x@W_ih^T + (b_ih + b_hh)
    whh_hbm: (Hp, 4*Hp)          raw HBM ref; copied once per batch block
    out_ref: (Tb, Bb, Hp)        hidden states for this time block
    cn_ref : (Bb, Hp)            final cell state (written on last time block)
    """
    tblk = pl.program_id(1)
    n_blk = pl.num_programs(1)
    Hp = h_scr.shape[1]

    @pl.when(tblk == 0)
    def _():
        # Single-buffered resident copy of W_hh^T (half the VMEM of a
        # double-buffered BlockSpec input) + per-batch-block state init.
        pltpu.sync_copy(whh_hbm, whh_scr)
        h_scr[...] = h0_ref[...]
        c_scr[...] = c0_ref[...]

    whh = whh_scr[...]                               # resident (Hp, 4Hp), hoisted
    # TODO(synk): hold W_hh in the MXU weight registers across the whole time
    # block (pltpu.matmul_push_rhs once per grid step + matmul_acc_lhs /
    # matmul_pop per timestep) so only the tiny (Bb, Hp) LHS is pushed per
    # step; kept as jnp.dot here for portable, guaranteed-correct lowering.

    def run_block(masked):
        def step(k, carry):
            h, c = carry                             # f32 (Bb, Hp)
            # Single MXU matmul on the serial recurrent path; the input
            # projection was precomputed and is just loaded from VMEM.
            gates = gx_ref[k] + jnp.dot(h.astype(whh.dtype), whh,
                                        preferred_element_type=jnp.float32)
            # 128-aligned gate slices (Hp is a multiple of 128).
            i_g = _sigmoid(gates[:, 0 * Hp:1 * Hp])
            f_g = _sigmoid(gates[:, 1 * Hp:2 * Hp])
            g_g = jnp.tanh(gates[:, 2 * Hp:3 * Hp])
            o_g = _sigmoid(gates[:, 3 * Hp:4 * Hp])
            c_new = f_g * c + i_g * g_g
            h_new = o_g * jnp.tanh(c_new)
            if masked:
                # Hold state on padded (>= t_real) timesteps of the tail block.
                valid = (tblk * t_block + k) < t_real
                h_new = jnp.where(valid, h_new, h)
                c_new = jnp.where(valid, c_new, c)
            out_ref[k] = h_new.astype(out_ref.dtype)  # lane-dense 128-wide store
            return h_new, c_new

        h, c = jax.lax.fori_loop(0, t_block, step,
                                 (h_scr[...], c_scr[...]), unroll=unroll)
        h_scr[...] = h
        c_scr[...] = c

    if t_real % t_block == 0:
        run_block(False)                 # no padded timesteps anywhere
    else:
        @pl.when(tblk < n_blk - 1)
        def _():
            run_block(False)             # full blocks: no per-step selects

        @pl.when(tblk == n_blk - 1)
        def _():
            run_block(True)              # ragged tail only

    @pl.when(tblk == n_blk - 1)
    def _():
        cn_ref[...] = c_scr[...].astype(cn_ref.dtype)


@functools.partial(jax.jit,
                   static_argnames=("time_block", "unroll", "num_batch_blocks"))
def _decoder_impl(params, input_seq, h0, c0, *, time_block, unroll,
                  num_batch_blocks):
    B, T, _ = input_seq.shape
    H = params["w_hh"].shape[1]
    out_dtype = input_seq.dtype
    w_dtype = params["w_hh"].dtype     # pass bf16 weights on v6e/v7x for MXU rate

    # Padded / blocked sizes.
    nb = max(1, int(num_batch_blocks))          # batch grid blocks (2 on v7x)
    Bb = _round_up(-(-B // nb), 8)              # per-block batch rows (sublanes)
    Bp = Bb * nb
    Hp = _round_up(H, 128)                      # lanes
    Tb = T if T <= time_block else time_block
    Tp = _round_up(T, Tb)
    n_blk = Tp // Tb

    # ---- Hoisted input projection: one big batch-parallel matmul (XLA). ----
    bias = params["b_ih"].astype(jnp.float32) + params["b_hh"].astype(jnp.float32)
    gx = jnp.einsum("btf,gf->tbg", input_seq, params["w_ih"],
                    preferred_element_type=jnp.float32) + bias          # (T,B,4H)
    # Pad each gate block H -> Hp (so slices are 128-aligned), B -> Bp, T -> Tp.
    gx = gx.reshape(T, B, 4, H)
    gx = jnp.pad(gx, ((0, Tp - T), (0, Bp - B), (0, 0), (0, Hp - H)))
    gx = gx.reshape(Tp, Bp, 4 * Hp)                                     # f32

    # ---- Recurrent weight, pre-transposed + gate-block padded. ----
    whh_t = params["w_hh"].T.reshape(H, 4, H)
    whh_t = jnp.pad(whh_t, ((0, Hp - H), (0, 0), (0, Hp - H)))
    whh_t = whh_t.reshape(Hp, 4 * Hp).astype(w_dtype)                   # (Hp,4Hp)

    h0p = jnp.pad(h0[0].astype(jnp.float32), ((0, Bp - B), (0, Hp - H)))
    c0p = jnp.pad(c0[0].astype(jnp.float32), ((0, Bp - B), (0, Hp - H)))

    kernel = functools.partial(_lstm_kernel, t_real=T, t_block=Tb,
                               unroll=max(1, min(unroll, Tb)))

    # ---- Explicit VMEM budget (double-buffered gx/out, single-copy weight). --
    f32b, wb, ob = 4, jnp.dtype(w_dtype).itemsize, jnp.dtype(out_dtype).itemsize
    need = (2 * Tb * Bb * 4 * Hp * f32b        # gx blocks
            + 2 * Tb * Bb * Hp * ob            # out blocks
            + Hp * 4 * Hp * wb                 # W_hh^T (single, scratch)
            + 2 * 2 * Bb * Hp * f32b           # h0 / c0 blocks
            + 2 * Bb * Hp * ob                 # c_n block
            + 2 * Bb * Hp * f32b)              # h / c scratch
    vmem_limit = int(min(max(2 * need, 32 * 1024 * 1024), 64 * 1024 * 1024))

    out_p, cn_p = pl.pallas_call(
        kernel,
        out_shape=(
            jax.ShapeDtypeStruct((Tp, Bp, Hp), out_dtype),   # all hidden states
            jax.ShapeDtypeStruct((Bp, Hp), out_dtype),       # final c
        ),
        grid_spec=pltpu.PrefetchScalarGridSpec(
            num_scalar_prefetch=0,
            grid=(nb, n_blk),
            in_specs=[
                pl.BlockSpec((Tb, Bb, 4 * Hp), lambda b, t: (t, b, 0)),  # gx
                pl.BlockSpec((Bb, Hp), lambda b, t: (b, 0)),             # h0
                pl.BlockSpec((Bb, Hp), lambda b, t: (b, 0)),             # c0
                pl.BlockSpec(memory_space=pl.ANY),                       # W_hh^T
            ],
            out_specs=[
                pl.BlockSpec((Tb, Bb, Hp), lambda b, t: (t, b, 0)),
                pl.BlockSpec((Bb, Hp), lambda b, t: (b, 0)),
            ],
            scratch_shapes=[
                pltpu.VMEM((Bb, Hp), jnp.float32),      # recurrent h (f32)
                pltpu.VMEM((Bb, Hp), jnp.float32),      # recurrent c (f32)
                pltpu.VMEM((Hp, 4 * Hp), w_dtype),      # resident W_hh^T (1 copy)
            ],
        ),
        compiler_params=pltpu.CompilerParams(
            dimension_semantics=("parallel", "arbitrary"),  # batch ||, time seq
            vmem_limit_bytes=vmem_limit),
    )(gx, h0p, c0p, whh_t)

    # Batch-first output (PyTorch semantics).
    # TODO(synk): consumers that accept time-major output can skip this
    # transpose (it is an extra HBM pass over the output).
    output = jnp.transpose(out_p[:T, :B, :H], (1, 0, 2))   # (B, T, H)
    h_n = out_p[T - 1, :B, :H][None]                       # (1, B, H)
    c_n = cn_p[:B, :H][None]                               # (1, B, H)
    return output, h_n, c_n


def init_decoder_params(key, hidden_size, nb_feature, dtype=jnp.float32):
    """Deterministic init matching nn.LSTM parameter shapes (num_layers=1)."""
    k = 1.0 / jnp.sqrt(jnp.asarray(hidden_size, jnp.float32))
    ks = jax.random.split(key, 4)
    w_ih = jax.random.uniform(ks[0], (4 * hidden_size, nb_feature), dtype, -k, k)
    w_hh = jax.random.uniform(ks[1], (4 * hidden_size, hidden_size), dtype, -k, k)
    b_ih = jax.random.uniform(ks[2], (4 * hidden_size,), dtype, -k, k)
    b_hh = jax.random.uniform(ks[3], (4 * hidden_size,), dtype, -k, k)
    return {"w_ih": w_ih, "w_hh": w_hh, "b_ih": b_ih, "b_hh": b_hh}


def decoder_forward(params, input_seq, hidden_cell=None, *,
                    time_block=32, unroll=8, num_batch_blocks=1):
    """Forward of Decoder: input_seq (B, T, F) ->
    (output (B, T, H), (h_n (1, B, H), c_n (1, B, H))).

    num_batch_blocks=2 splits the batch over a parallel grid axis (use on v7x,
    which has 2 TensorCores, when the padded batch is >= 16); keep the default
    of 1 on single-TensorCore v5e/v6e.
    """
    B, T, _ = input_seq.shape
    H = params["w_hh"].shape[1]
    dtype = input_seq.dtype

    if hidden_cell is None:
        h0 = jnp.zeros((1, B, H), dtype)
        c0 = jnp.zeros((1, B, H), dtype)
    else:
        h0, c0 = hidden_cell

    out, h_n, c_n = _decoder_impl(params, input_seq, h0, c0,
                                  time_block=time_block, unroll=unroll,
                                  num_batch_blocks=num_batch_blocks)
    return out, (h_n, c_n)


def _reference_forward(params, input_seq, hidden_cell=None):
    """Pure-JAX LSTM reference (PyTorch semantics) for validation."""
    B, T, _ = input_seq.shape
    H = params["w_hh"].shape[1]
    if hidden_cell is None:
        h = jnp.zeros((B, H), jnp.float32)
        c = jnp.zeros((B, H), jnp.float32)
    else:
        h = hidden_cell[0][0].astype(jnp.float32)
        c = hidden_cell[1][0].astype(jnp.float32)

    w_ih, w_hh = params["w_ih"], params["w_hh"]
    b = params["b_ih"] + params["b_hh"]

    def step(carry, x_t):
        h, c = carry
        gates = x_t @ w_ih.T + h @ w_hh.T + b
        i, f, g, o = jnp.split(gates, 4, axis=-1)
        i, f, o = jax.nn.sigmoid(i), jax.nn.sigmoid(f), jax.nn.sigmoid(o)
        g = jnp.tanh(g)
        c = f * c + i * g
        h = o * jnp.tanh(c)
        return (h, c), h

    (h, c), ys = jax.lax.scan(step, (h, c),
                              jnp.transpose(input_seq, (1, 0, 2)).astype(jnp.float32))
    return jnp.transpose(ys, (1, 0, 2)), (h[None], c[None])


if __name__ == "__main__":
    B, T, F, H = 2, 8, 4, 32

    key = jax.random.PRNGKey(0)
    k_param, k_x = jax.random.split(key)
    params = init_decoder_params(k_param, hidden_size=H, nb_feature=F)
    x = jax.random.normal(k_x, (B, T, F), jnp.float32)

    out, (h_n, c_n) = decoder_forward(params, x)
    jax.block_until_ready((out, h_n, c_n))

    ref_out, (ref_h, ref_c) = _reference_forward(params, x)
    assert out.shape == (B, T, H) and h_n.shape == (1, B, H) and c_n.shape == (1, B, H)
    assert jnp.allclose(out, ref_out, atol=1e-4, rtol=1e-4)
    assert jnp.allclose(h_n, ref_h, atol=1e-4, rtol=1e-4)
    assert jnp.allclose(c_n, ref_c, atol=1e-4, rtol=1e-4)

    # Case 2: B not a multiple of 8, T < time_block, user-provided (h0, c0).
    B2, T2 = 3, 21
    k1, k2, k3 = jax.random.split(k_x, 3)
    x2 = jax.random.normal(k1, (B2, T2, F), jnp.float32)
    h0 = 0.1 * jax.random.normal(k2, (1, B2, H), jnp.float32)
    c0 = 0.1 * jax.random.normal(k3, (1, B2, H), jnp.float32)

    out2, (h2, c2) = decoder_forward(params, x2, (h0, c0))
    jax.block_until_ready((out2, h2, c2))
    ref2, (rh2, rc2) = _reference_forward(params, x2, (h0, c0))
    assert out2.shape == (B2, T2, H)
    assert jnp.allclose(out2, ref2, atol=1e-4, rtol=1e-4)
    assert jnp.allclose(h2, rh2, atol=1e-4, rtol=1e-4)
    assert jnp.allclose(c2, rc2, atol=1e-4, rtol=1e-4)

    # Case 3: multi time-block with ragged tail (T=40 > time_block=32) and the
    # batch split over 2 grid blocks (v7x megacore path; also correct on 1 TC).
    B3, T3 = 16, 40
    k4, _ = jax.random.split(k1)
    x3 = jax.random.normal(k4, (B3, T3, F), jnp.float32)
    out3, (h3, c3) = decoder_forward(params, x3, num_batch_blocks=2)
    jax.block_until_ready((out3, h3, c3))
    ref3, (rh3, rc3) = _reference_forward(params, x3)
    assert out3.shape == (B3, T3, H)
    assert jnp.allclose(out3, ref3, atol=1e-4, rtol=1e-4)
    assert jnp.allclose(h3, rh3, atol=1e-4, rtol=1e-4)
    assert jnp.allclose(c3, rc3, atol=1e-4, rtol=1e-4)

    print("KERNEL_OK")
</pallas_src>

<mosaic_0001>
module attributes {stable_mosaic.version = 11 : i64} {
  func.func @_lstm_kernel(%arg0: i32, %arg1: i32, %arg2: memref<8x8x512xf32, #tpu.memory_space<vmem>>, %arg3: memref<8x128xf32, #tpu.memory_space<vmem>>, %arg4: memref<8x128xf32, #tpu.memory_space<vmem>>, %arg5: memref<128x512xf32, #tpu.memory_space<any>>, %arg6: memref<8x8x128xf32, #tpu.memory_space<vmem>>, %arg7: memref<8x128xf32, #tpu.memory_space<vmem>>, %arg8: memref<8x128xf32, #tpu.memory_space<vmem>>, %arg9: memref<8x128xf32, #tpu.memory_space<vmem>>, %arg10: memref<128x512xf32, #tpu.memory_space<vmem>>) attributes {dimension_semantics = [#tpu.dimension_semantics<parallel>, #tpu.dimension_semantics<arbitrary>], iteration_bounds = array<i64: 1, 1>, scalar_prefetch = 0 : i64, scratch_operands = 3 : i64, tpu.core_type = #tpu.core_type<tc>, window_params = [{transform_indices = @transform_0, window_bounds = array<i64: 8, 8, 512>}, {transform_indices = @transform_1, window_bounds = array<i64: 8, 128>}, {transform_indices = @transform_2, window_bounds = array<i64: 8, 128>}, {}, {transform_indices = @transform_4, window_bounds = array<i64: 8, 8, 128>}, {transform_indices = @transform_5, window_bounds = array<i64: 8, 128>}]} {
    %c0_i32 = arith.constant 0 : i32
    %0 = arith.cmpi eq, %arg1, %c0_i32 : i32
    %1 = arith.extui %0 : i1 to i32
    %c0_i32_0 = arith.constant 0 : i32
    %2 = arith.cmpi ne, %1, %c0_i32_0 : i32
    scf.if %2 {
      "tpu.region"() ({
        %335 = tpu.sem_alloc : memref<!tpu.dma_semaphore, #tpu.memory_space<semaphore_mem>>
        tpu.enqueue_dma source(%arg5 : memref<128x512xf32, #tpu.memory_space<any>>) target(%arg10 : memref<128x512xf32, #tpu.memory_space<vmem>>) target_semaphore(%335 : memref<!tpu.dma_semaphore, #tpu.memory_space<semaphore_mem>>)
        tpu.wait_dma2 semaphore(%335 : memref<!tpu.dma_semaphore, #tpu.memory_space<semaphore_mem>>) src(%arg5 : memref<128x512xf32, #tpu.memory_space<any>>) dst(%arg10 : memref<128x512xf32, #tpu.memory_space<vmem>>)
        tpu.yield
      }) : () -> ()
      %c0_124 = arith.constant 0 : index
      %c0_125 = arith.constant 0 : index
      %331 = vector.load %arg3[%c0_124, %c0_125] : memref<8x128xf32, #tpu.memory_space<vmem>>, vector<8x128xf32>
      %c0_126 = arith.constant 0 : index
      %c0_127 = arith.constant 0 : index
      %332 = vector.load %arg8[%c0_126, %c0_127] : memref<8x128xf32, #tpu.memory_space<vmem>>, vector<8x128xf32>
      tpu.vector_store %arg8[%c0_126, %c0_127], %331 {strides = array<i32>} : memref<8x128xf32, #tpu.memory_space<vmem>>, vector<8x128xf32>,
      %c0_128 = arith.constant 0 : index
      %c0_129 = arith.constant 0 : index
      %333 = vector.load %arg4[%c0_128, %c0_129] : memref<8x128xf32, #tpu.memory_space<vmem>>, vector<8x128xf32>
      %c0_130 = arith.constant 0 : index
      %c0_131 = arith.constant 0 : index
      %334 = vector.load %arg9[%c0_130, %c0_131] : memref<8x128xf32, #tpu.memory_space<vmem>>, vector<8x128xf32>
      tpu.vector_store %arg9[%c0_130, %c0_131], %333 {strides = array<i32>} : memref<8x128xf32, #tpu.memory_space<vmem>>, vector<8x128xf32>,
    } else {
    }
    %c0 = arith.constant 0 : index
    %c0_1 = arith.constant 0 : index
    %3 = vector.load %arg10[%c0, %c0_1] : memref<128x512xf32, #tpu.memory_space<vmem>>, vector<128x512xf32>
    %c0_2 = arith.constant 0 : index
    %c0_3 = arith.constant 0 : index
    %4 = vector.load %arg8[%c0_2, %c0_3] : memref<8x128xf32, #tpu.memory_space<vmem>>, vector<8x128xf32>
    %c0_4 = arith.constant 0 : index
    %c0_5 = arith.constant 0 : index
    %5 = vector.load %arg9[%c0_4, %c0_5] : memref<8x128xf32, #tpu.memory_space<vmem>>, vector<8x128xf32>
    %c0_i32_6 = arith.constant 0 : i32
    %6 = arith.index_cast %c0_i32_6 : i32 to index
    %c0_7 = arith.constant 0 : index
    %c0_8 = arith.constant 0 : index
    %7 = vector.load %arg2[%6, %c0_7, %c0_8] : memref<8x8x512xf32, #tpu.memory_space<vmem>>, vector<1x8x512xf32>
    %8 = vector.shape_cast %7 : vector<1x8x512xf32> to vector<8x512xf32>
    %cst = arith.constant dense<0.000000e+00> : vector<8x512xf32>
    %9 = tpu.matmul %4, %3, %cst {dimension_numbers = #tpu.dot_dimension_numbers<[1], [0], [0], [1], [0, 0, 1, 1], [], []>} : vector<8x128xf32>, vector<128x512xf32>, vector<8x512xf32> -> vector<8x512xf32>
    %10 = arith.addf %8, %9 : vector<8x512xf32>
    %11 = vector.extract_strided_slice %10 {offsets = [0, 0], sizes = [8, 128], strides = [1, 1]} : vector<8x512xf32> to vector<8x128xf32>
    %cst_9 = arith.constant 5.000000e-01 : f32
    %12 = vector.broadcast %cst_9 : f32 to vector<8x128xf32>
    %13 = arith.mulf %12, %11 : vector<8x128xf32>
    %14 = math.tanh %13 : vector<8x128xf32>
    %cst_10 = arith.constant 5.000000e-01 : f32
    %15 = vector.broadcast %cst_10 : f32 to vector<8x128xf32>
    %16 = arith.mulf %15, %14 : vector<8x128xf32>
    %cst_11 = arith.constant 5.000000e-01 : f32
    %17 = vector.broadcast %cst_11 : f32 to vector<8x128xf32>
    %18 = arith.addf %16, %17 : vector<8x128xf32>
    %19 = vector.extract_strided_slice %10 {offsets = [0, 128], sizes = [8, 128], strides = [1, 1]} : vector<8x512xf32> to vector<8x128xf32>
    %cst_12 = arith.constant 5.000000e-01 : f32
    %20 = vector.broadcast %cst_12 : f32 to vector<8x128xf32>
    %21 = arith.mulf %20, %19 : vector<8x128xf32>
    %22 = math.tanh %21 : vector<8x128xf32>
    %cst_13 = arith.constant 5.000000e-01 : f32
    %23 = vector.broadcast %cst_13 : f32 to vector<8x128xf32>
    %24 = arith.mulf %23, %22 : vector<8x128xf32>
    %cst_14 = arith.constant 5.000000e-01 : f32
    %25 = vector.broadcast %cst_14 : f32 to vector<8x128xf32>
    %26 = arith.addf %24, %25 : vector<8x128xf32>
    %27 = vector.extract_strided_slice %10 {offsets = [0, 256], sizes = [8, 128], strides = [1, 1]} : vector<8x512xf32> to vector<8x128xf32>
    %28 = math.tanh %27 : vector<8x128xf32>
    %29 = vector.extract_strided_slice %10 {offsets = [0, 384], sizes = [8, 128], strides = [1, 1]} : vector<8x512xf32> to vector<8x128xf32>
    %cst_15 = arith.constant 5.000000e-01 : f32
    %30 = vector.broadcast %cst_15 : f32 to vector<8x128xf32>
    %31 = arith.mulf %30, %29 : vector<8x128xf32>
    %32 = math.tanh %31 : vector<8x128xf32>
    %cst_16 = arith.constant 5.000000e-01 : f32
    %33 = vector.broadcast %cst_16 : f32 to vector<8x128xf32>
    %34 = arith.mulf %33, %32 : vector<8x128xf32>
    %cst_17 = arith.constant 5.000000e-01 : f32
    %35 = vector.broadcast %cst_17 : f32 to vector<8x128xf32>
    %36 = arith.addf %34, %35 : vector<8x128xf32>
    %37 = arith.mulf %26, %5 : vector<8x128xf32>
    %38 = arith.mulf %18, %28 : vector<8x128xf32>
    %39 = arith.addf %37, %38 : vector<8x128xf32>
    %40 = math.tanh %39 : vector<8x128xf32>
    %41 = arith.mulf %36, %40 : vector<8x128xf32>
    %42 = arith.index_cast %c0_i32_6 : i32 to index
    %c0_18 = arith.constant 0 : index
    %c0_19 = arith.constant 0 : index
    %43 = vector.load %arg6[%42, %c0_18, %c0_19] : memref<8x8x128xf32, #tpu.memory_space<vmem>>, vector<1x8x128xf32>
    %44 = vector.shape_cast %43 : vector<1x8x128xf32> to vector<8x128xf32>
    %45 = vector.shape_cast %41 : vector<8x128xf32> to vector<1x8x128xf32>
    tpu.vector_store %arg6[%42, %c0_18, %c0_19], %45 {strides = array<i32>} : memref<8x8x128xf32, #tpu.memory_space<vmem>>, vector<1x8x128xf32>,
    %c1_i32 = arith.constant 1 : i32
    %46 = arith.index_cast %c1_i32 : i32 to index
    %c0_20 = arith.constant 0 : index
    %c0_21 = arith.constant 0 : index
    %47 = vector.load %arg2[%46, %c0_20, %c0_21] : memref<8x8x512xf32, #tpu.memory_space<vmem>>, vector<1x8x512xf32>
    %48 = vector.shape_cast %47 : vector<1x8x512xf32> to vector<8x512xf32>
    %cst_22 = arith.constant dense<0.000000e+00> : vector<8x512xf32>
    %49 = tpu.matmul %41, %3, %cst_22 {dimension_numbers = #tpu.dot_dimension_numbers<[1], [0], [0], [1], [0, 0, 1, 1], [], []>} : vector<8x128xf32>, vector<128x512xf32>, vector<8x512xf32> -> vector<8x512xf32>
    %50 = arith.addf %48, %49 : vector<8x512xf32>
    %51 = vector.extract_strided_slice %50 {offsets = [0, 0], sizes = [8, 128], strides = [1, 1]} : vector<8x512xf32> to vector<8x128xf32>
    %cst_23 = arith.constant 5.000000e-01 : f32
    %52 = vector.broadcast %cst_23 : f32 to vector<8x128xf32>
    %53 = arith.mulf %52, %51 : vector<8x128xf32>
    %54 = math.tanh %53 : vector<8x128xf32>
    %cst_24 = arith.constant 5.000000e-01 : f32
    %55 = vector.broadcast %cst_24 : f32 to vector<8x128xf32>
    %56 = arith.mulf %55, %54 : vector<8x128xf32>
    %cst_25 = arith.constant 5.000000e-01 : f32
    %57 = vector.broadcast %cst_25 : f32 to vector<8x128xf32>
    %58 = arith.addf %56, %57 : vector<8x128xf32>
    %59 = vector.extract_strided_slice %50 {offsets = [0, 128], sizes = [8, 128], strides = [1, 1]} : vector<8x512xf32> to vector<8x128xf32>
    %cst_26 = arith.constant 5.000000e-01 : f32
    %60 = vector.broadcast %cst_26 : f32 to vector<8x128xf32>
    %61 = arith.mulf %60, %59 : vector<8x128xf32>
    %62 = math.tanh %61 : vector<8x128xf32>
    %cst_27 = arith.constant 5.000000e-01 : f32
    %63 = vector.broadcast %cst_27 : f32 to vector<8x128xf32>
    %64 = arith.mulf %63, %62 : vector<8x128xf32>
    %cst_28 = arith.constant 5.000000e-01 : f32
    %65 = vector.broadcast %cst_28 : f32 to vector<8x128xf32>
    %66 = arith.addf %64, %65 : vector<8x128xf32>
    %67 = vector.extract_strided_slice %50 {offsets = [0, 256], sizes = [8, 128], strides = [1, 1]} : vector<8x512xf32> to vector<8x128xf32>
    %68 = math.tanh %67 : vector<8x128xf32>
    %69 = vector.extract_strided_slice %50 {offsets = [0, 384], sizes = [8, 128], strides = [1, 1]} : vector<8x512xf32> to vector<8x128xf32>
    %cst_29 = arith.constant 5.000000e-01 : f32
    %70 = vector.broadcast %cst_29 : f32 to vector<8x128xf32>
    %71 = arith.mulf %70, %69 : vector<8x128xf32>
    %72 = math.tanh %71 : vector<8x128xf32>
    %cst_30 = arith.constant 5.000000e-01 : f32
    %73 = vector.broadcast %cst_30 : f32 to vector<8x128xf32>
    %74 = arith.mulf %73, %72 : vector<8x128xf32>
    %cst_31 = arith.constant 5.000000e-01 : f32
    %75 = vector.broadcast %cst_31 : f32 to vector<8x128xf32>
    %76 = arith.addf %74, %75 : vector<8x128xf32>
    %77 = arith.mulf %66, %39 : vector<8x128xf32>
    %78 = arith.mulf %58, %68 : vector<8x128xf32>
    %79 = arith.addf %77, %78 : vector<8x128xf32>
    %80 = math.tanh %79 : vector<8x128xf32>
    %81 = arith.mulf %76, %80 : vector<8x128xf32>
    %82 = arith.index_cast %c1_i32 : i32 to index
    %c0_32 = arith.constant 0 : index
    %c0_33 = arith.constant 0 : index
    %83 = vector.load %arg6[%82, %c0_32, %c0_33] : memref<8x8x128xf32, #tpu.memory_space<vmem>>, vector<1x8x128xf32>
    %84 = vector.shape_cast %83 : vector<1x8x128xf32> to vector<8x128xf32>
    %85 = vector.shape_cast %81 : vector<8x128xf32> to vector<1x8x128xf32>
    tpu.vector_store %arg6[%82, %c0_32, %c0_33], %85 {strides = array<i32>} : memref<8x8x128xf32, #tpu.memory_space<vmem>>, vector<1x8x128xf32>,
    %c2_i32 = arith.constant 2 : i32
    %86 = arith.index_cast %c2_i32 : i32 to index
    %c0_34 = arith.constant 0 : index
    %c0_35 = arith.constant 0 : index
    %87 = vector.load %arg2[%86, %c0_34, %c0_35] : memref<8x8x512xf32, #tpu.memory_space<vmem>>, vector<1x8x512xf32>
    %88 = vector.shape_cast %87 : vector<1x8x512xf32> to vector<8x512xf32>
    %cst_36 = arith.constant dense<0.000000e+00> : vector<8x512xf32>
    %89 = tpu.matmul %81, %3, %cst_36 {dimension_numbers = #tpu.dot_dimension_numbers<[1], [0], [0], [1], [0, 0, 1, 1], [], []>} : vector<8x128xf32>, vector<128x512xf32>, vector<8x512xf32> -> vector<8x512xf32>
    %90 = arith.addf %88, %89 : vector<8x512xf32>
    %91 = vector.extract_strided_slice %90 {offsets = [0, 0], sizes = [8, 128], strides = [1, 1]} : vector<8x512xf32> to vector<8x128xf32>
    %cst_37 = arith.constant 5.000000e-01 : f32
    %92 = vector.broadcast %cst_37 : f32 to vector<8x128xf32>
    %93 = arith.mulf %92, %91 : vector<8x128xf32>
    %94 = math.tanh %93 : vector<8x128xf32>
    %cst_38 = arith.constant 5.000000e-01 : f32
    %95 = vector.broadcast %cst_38 : f32 to vector<8x128xf32>
    %96 = arith.mulf %95, %94 : vector<8x128xf32>
    %cst_39 = arith.constant 5.000000e-01 : f32
    %97 = vector.broadcast %cst_39 : f32 to vector<8x128xf32>
    %98 = arith.addf %96, %97 : vector<8x128xf32>
    %99 = vector.extract_strided_slice %90 {offsets = [0, 128], sizes = [8, 128], strides = [1, 1]} : vector<8x512xf32> to vector<8x128xf32>
    %cst_40 = arith.constant 5.000000e-01 : f32
    %100 = vector.broadcast %cst_40 : f32 to vector<8x128xf32>
    %101 = arith.mulf %100, %99 : vector<8x128xf32>
    %102 = math.tanh %101 : vector<8x128xf32>
    %cst_41 = arith.constant 5.000000e-01 : f32
    %103 = vector.broadcast %cst_41 : f32 to vector<8x128xf32>
    %104 = arith.mulf %103, %102 : vector<8x128xf32>
    %cst_42 = arith.constant 5.000000e-01 : f32
    %105 = vector.broadcast %cst_42 : f32 to vector<8x128xf32>
    %106 = arith.addf %104, %105 : vector<8x128xf32>
    %107 = vector.extract_strided_slice %90 {offsets = [0, 256], sizes = [8, 128], strides = [1, 1]} : vector<8x512xf32> to vector<8x128xf32>
    %108 = math.tanh %107 : vector<8x128xf32>
    %109 = vector.extract_strided_slice %90 {offsets = [0, 384], sizes = [8, 128], strides = [1, 1]} : vector<8x512xf32> to vector<8x128xf32>
    %cst_43 = arith.constant 5.000000e-01 : f32
    %110 = vector.broadcast %cst_43 : f32 to vector<8x128xf32>
    %111 = arith.mulf %110, %109 : vector<8x128xf32>
    %112 = math.tanh %111 : vector<8x128xf32>
    %cst_44 = arith.constant 5.000000e-01 : f32
    %113 = vector.broadcast %cst_44 : f32 to vector<8x128xf32>
    %114 = arith.mulf %113, %112 : vector<8x128xf32>
    %cst_45 = arith.constant 5.000000e-01 : f32
    %115 = vector.broadcast %cst_45 : f32 to vector<8x128xf32>
    %116 = arith.addf %114, %115 : vector<8x128xf32>
    %117 = arith.mulf %106, %79 : vector<8x128xf32>
    %118 = arith.mulf %98, %108 : vector<8x128xf32>
    %119 = arith.addf %117, %118 : vector<8x128xf32>
    %120 = math.tanh %119 : vector<8x128xf32>
    %121 = arith.mulf %116, %120 : vector<8x128xf32>
    %122 = arith.index_cast %c2_i32 : i32 to index
    %c0_46 = arith.constant 0 : index
    %c0_47 = arith.constant 0 : index
    %123 = vector.load %arg6[%122, %c0_46, %c0_47] : memref<8x8x128xf32, #tpu.memory_space<vmem>>, vector<1x8x128xf32>
    %124 = vector.shape_cast %123 : vector<1x8x128xf32> to vector<8x128xf32>
    %125 = vector.shape_cast %121 : vector<8x128xf32> to vector<1x8x128xf32>
    tpu.vector_store %arg6[%122, %c0_46, %c0_47], %125 {strides = array<i32>} : memref<8x8x128xf32, #tpu.memory_space<vmem>>, vector<1x8x128xf32>,
    %c3_i32 = arith.constant 3 : i32
    %126 = arith.index_cast %c3_i32 : i32 to index
    %c0_48 = arith.constant 0 : index
    %c0_49 = arith.constant 0 : index
    %127 = vector.load %arg2[%126, %c0_48, %c0_49] : memref<8x8x512xf32, #tpu.memory_space<vmem>>, vector<1x8x512xf32>
    %128 = vector.shape_cast %127 : vector<1x8x512xf32> to vector<8x512xf32>
    %cst_50 = arith.constant dense<0.000000e+00> : vector<8x512xf32>
    %129 = tpu.matmul %121, %3, %cst_50 {dimension_numbers = #tpu.dot_dimension_numbers<[1], [0], [0], [1], [0, 0, 1, 1], [], []>} : vector<8x128xf32>, vector<128x512xf32>, vector<8x512xf32> -> vector<8x512xf32>
    %130 = arith.addf %128, %129 : vector<8x512xf32>
    %131 = vector.extract_strided_slice %130 {offsets = [0, 0], sizes = [8, 128], strides = [1, 1]} : vector<8x512xf32> to vector<8x128xf32>
    %cst_51 = arith.constant 5.000000e-01 : f32
    %132 = vector.broadcast %cst_51 : f32 to vector<8x128xf32>
    %133 = arith.mulf %132, %131 : vector<8x128xf32>
    %134 = math.tanh %133 : vector<8x128xf32>
    %cst_52 = arith.constant 5.000000e-01 : f32
    %135 = vector.broadcast %cst_52 : f32 to vector<8x128xf32>
    %136 = arith.mulf %135, %134 : vector<8x128xf32>
    %cst_53 = arith.constant 5.000000e-01 : f32
    %137 = vector.broadcast %cst_53 : f32 to vector<8x128xf32>
    %138 = arith.addf %136, %137 : vector<8x128xf32>
    %139 = vector.extract_strided_slice %130 {offsets = [0, 128], sizes = [8, 128], strides = [1, 1]} : vector<8x512xf32> to vector<8x128xf32>
    %cst_54 = arith.constant 5.000000e-01 : f32
    %140 = vector.broadcast %cst_54 : f32 to vector<8x128xf32>
    %141 = arith.mulf %140, %139 : vector<8x128xf32>
    %142 = math.tanh %141 : vector<8x128xf32>
    %cst_55 = arith.constant 5.000000e-01 : f32
    %143 = vector.broadcast %cst_55 : f32 to vector<8x128xf32>
    %144 = arith.mulf %143, %142 : vector<8x128xf32>
    %cst_56 = arith.constant 5.000000e-01 : f32
    %145 = vector.broadcast %cst_56 : f32 to vector<8x128xf32>
    %146 = arith.addf %144, %145 : vector<8x128xf32>
    %147 = vector.extract_strided_slice %130 {offsets = [0, 256], sizes = [8, 128], strides = [1, 1]} : vector<8x512xf32> to vector<8x128xf32>
    %148 = math.tanh %147 : vector<8x128xf32>
    %149 = vector.extract_strided_slice %130 {offsets = [0, 384], sizes = [8, 128], strides = [1, 1]} : vector<8x512xf32> to vector<8x128xf32>
    %cst_57 = arith.constant 5.000000e-01 : f32
    %150 = vector.broadcast %cst_57 : f32 to vector<8x128xf32>
    %151 = arith.mulf %150, %149 : vector<8x128xf32>
    %152 = math.tanh %151 : vector<8x128xf32>
    %cst_58 = arith.constant 5.000000e-01 : f32
    %153 = vector.broadcast %cst_58 : f32 to vector<8x128xf32>
    %154 = arith.mulf %153, %152 : vector<8x128xf32>
    %cst_59 = arith.constant 5.000000e-01 : f32
    %155 = vector.broadcast %cst_59 : f32 to vector<8x128xf32>
    %156 = arith.addf %154, %155 : vector<8x128xf32>
    %157 = arith.mulf %146, %119 : vector<8x128xf32>
    %158 = arith.mulf %138, %148 : vector<8x128xf32>
    %159 = arith.addf %157, %158 : vector<8x128xf32>
    %160 = math.tanh %159 : vector<8x128xf32>
    %161 = arith.mulf %156, %160 : vector<8x128xf32>
    %162 = arith.index_cast %c3_i32 : i32 to index
    %c0_60 = arith.constant 0 : index
    %c0_61 = arith.constant 0 : index
    %163 = vector.load %arg6[%162, %c0_60, %c0_61] : memref<8x8x128xf32, #tpu.memory_space<vmem>>, vector<1x8x128xf32>
    %164 = vector.shape_cast %163 : vector<1x8x128xf32> to vector<8x128xf32>
    %165 = vector.shape_cast %161 : vector<8x128xf32> to vector<1x8x128xf32>
    tpu.vector_store %arg6[%162, %c0_60, %c0_61], %165 {strides = array<i32>} : memref<8x8x128xf32, #tpu.memory_space<vmem>>, vector<1x8x128xf32>,
    %c4_i32 = arith.constant 4 : i32
    %166 = arith.index_cast %c4_i32 : i32 to index
    %c0_62 = arith.constant 0 : index
    %c0_63 = arith.constant 0 : index
    %167 = vector.load %arg2[%166, %c0_62, %c0_63] : memref<8x8x512xf32, #tpu.memory_space<vmem>>, vector<1x8x512xf32>
    %168 = vector.shape_cast %167 : vector<1x8x512xf32> to vector<8x512xf32>
    %cst_64 = arith.constant dense<0.000000e+00> : vector<8x512xf32>
    %169 = tpu.matmul %161, %3, %cst_64 {dimension_numbers = #tpu.dot_dimension_numbers<[1], [0], [0], [1], [0, 0, 1, 1], [], []>} : vector<8x128xf32>, vector<128x512xf32>, vector<8x512xf32> -> vector<8x512xf32>
    %170 = arith.addf %168, %169 : vector<8x512xf32>
    %171 = vector.extract_strided_slice %170 {offsets = [0, 0], sizes = [8, 128], strides = [1, 1]} : vector<8x512xf32> to vector<8x128xf32>
    %cst_65 = arith.constant 5.000000e-01 : f32
    %172 = vector.broadcast %cst_65 : f32 to vector<8x128xf32>
    %173 = arith.mulf %172, %171 : vector<8x128xf32>
    %174 = math.tanh %173 : vector<8x128xf32>
    %cst_66 = arith.constant 5.000000e-01 : f32
    %175 = vector.broadcast %cst_66 : f32 to vector<8x128xf32>
    %176 = arith.mulf %175, %174 : vector<8x128xf32>
    %cst_67 = arith.constant 5.000000e-01 : f32
    %177 = vector.broadcast %cst_67 : f32 to vector<8x128xf32>
    %178 = arith.addf %176, %177 : vector<8x128xf32>
    %179 = vector.extract_strided_slice %170 {offsets = [0, 128], sizes = [8, 128], strides = [1, 1]} : vector<8x512xf32> to vector<8x128xf32>
    %cst_68 = arith.constant 5.000000e-01 : f32
    %180 = vector.broadcast %cst_68 : f32 to vector<8x128xf32>
    %181 = arith.mulf %180, %179 : vector<8x128xf32>
    %182 = math.tanh %181 : vector<8x128xf32>
    %cst_69 = arith.constant 5.000000e-01 : f32
    %183 = vector.broadcast %cst_69 : f32 to vector<8x128xf32>
    %184 = arith.mulf %183, %182 : vector<8x128xf32>
    %cst_70 = arith.constant 5.000000e-01 : f32
    %185 = vector.broadcast %cst_70 : f32 to vector<8x128xf32>
    %186 = arith.addf %184, %185 : vector<8x128xf32>
    %187 = vector.extract_strided_slice %170 {offsets = [0, 256], sizes = [8, 128], strides = [1, 1]} : vector<8x512xf32> to vector<8x128xf32>
    %188 = math.tanh %187 : vector<8x128xf32>
    %189 = vector.extract_strided_slice %170 {offsets = [0, 384], sizes = [8, 128], strides = [1, 1]} : vector<8x512xf32> to vector<8x128xf32>
    %cst_71 = arith.constant 5.000000e-01 : f32
    %190 = vector.broadcast %cst_71 : f32 to vector<8x128xf32>
    %191 = arith.mulf %190, %189 : vector<8x128xf32>
    %192 = math.tanh %191 : vector<8x128xf32>
    %cst_72 = arith.constant 5.000000e-01 : f32
    %193 = vector.broadcast %cst_72 : f32 to vector<8x128xf32>
    %194 = arith.mulf %193, %192 : vector<8x128xf32>
    %cst_73 = arith.constant 5.000000e-01 : f32
    %195 = vector.broadcast %cst_73 : f32 to vector<8x128xf32>
    %196 = arith.addf %194, %195 : vector<8x128xf32>
    %197 = arith.mulf %186, %159 : vector<8x128xf32>
    %198 = arith.mulf %178, %188 : vector<8x128xf32>
    %199 = arith.addf %197, %198 : vector<8x128xf32>
    %200 = math.tanh %199 : vector<8x128xf32>
    %201 = arith.mulf %196, %200 : vector<8x128xf32>
    %202 = arith.index_cast %c4_i32 : i32 to index
    %c0_74 = arith.constant 0 : index
    %c0_75 = arith.constant 0 : index
    %203 = vector.load %arg6[%202, %c0_74, %c0_75] : memref<8x8x128xf32, #tpu.memory_space<vmem>>, vector<1x8x128xf32>
    %204 = vector.shape_cast %203 : vector<1x8x128xf32> to vector<8x128xf32>
    %205 = vector.shape_cast %201 : vector<8x128xf32> to vector<1x8x128xf32>
    tpu.vector_store %arg6[%202, %c0_74, %c0_75], %205 {strides = array<i32>} : memref<8x8x128xf32, #tpu.memory_space<vmem>>, vector<1x8x128xf32>,
    %c5_i32 = arith.constant 5 : i32
    %206 = arith.index_cast %c5_i32 : i32 to index
    %c0_76 = arith.constant 0 : index
    %c0_77 = arith.constant 0 : index
    %207 = vector.load %arg2[%206, %c0_76, %c0_77] : memref<8x8x512xf32, #tpu.memory_space<vmem>>, vector<1x8x512xf32>
    %208 = vector.shape_cast %207 : vector<1x8x512xf32> to vector<8x512xf32>
    %cst_78 = arith.constant dense<0.000000e+00> : vector<8x512xf32>
    %209 = tpu.matmul %201, %3, %cst_78 {dimension_numbers = #tpu.dot_dimension_numbers<[1], [0], [0], [1], [0, 0, 1, 1], [], []>} : vector<8x128xf32>, vector<128x512xf32>, vector<8x512xf32> -> vector<8x512xf32>
    %210 = arith.addf %208, %209 : vector<8x512xf32>
    %211 = vector.extract_strided_slice %210 {offsets = [0, 0], sizes = [8, 128], strides = [1, 1]} : vector<8x512xf32> to vector<8x128xf32>
    %cst_79 = arith.constant 5.000000e-01 : f32
    %212 = vector.broadcast %cst_79 : f32 to vector<8x128xf32>
    %213 = arith.mulf %212, %211 : vector<8x128xf32>
    %214 = math.tanh %213 : vector<8x128xf32>
    %cst_80 = arith.constant 5.000000e-01 : f32
    %215 = vector.broadcast %cst_80 : f32 to vector<8x128xf32>
    %216 = arith.mulf %215, %214 : vector<8x128xf32>
    %cst_81 = arith.constant 5.000000e-01 : f32
    %217 = vector.broadcast %cst_81 : f32 to vector<8x128xf32>
    %218 = arith.addf %216, %217 : vector<8x128xf32>
    %219 = vector.extract_strided_slice %210 {offsets = [0, 128], sizes = [8, 128], strides = [1, 1]} : vector<8x512xf32> to vector<8x128xf32>
    %cst_82 = arith.constant 5.000000e-01 : f32
    %220 = vector.broadcast %cst_82 : f32 to vector<8x128xf32>
    %221 = arith.mulf %220, %219 : vector<8x128xf32>
    %222 = math.tanh %221 : vector<8x128xf32>
    %cst_83 = arith.constant 5.000000e-01 : f32
    %223 = vector.broadcast %cst_83 : f32 to vector<8x128xf32>
    %224 = arith.mulf %223, %222 : vector<8x128xf32>
    %cst_84 = arith.constant 5.000000e-01 : f32
    %225 = vector.broadcast %cst_84 : f32 to vector<8x128xf32>
    %226 = arith.addf %224, %225 : vector<8x128xf32>
    %227 = vector.extract_strided_slice %210 {offsets = [0, 256], sizes = [8, 128], strides = [1, 1]} : vector<8x512xf32> to vector<8x128xf32>
    %228 = math.tanh %227 : vector<8x128xf32>
    %229 = vector.extract_strided_slice %210 {offsets = [0, 384], sizes = [8, 128], strides = [1, 1]} : vector<8x512xf32> to vector<8x128xf32>
    %cst_85 = arith.constant 5.000000e-01 : f32
    %230 = vector.broadcast %cst_85 : f32 to vector<8x128xf32>
    %231 = arith.mulf %230, %229 : vector<8x128xf32>
    %232 = math.tanh %231 : vector<8x128xf32>
    %cst_86 = arith.constant 5.000000e-01 : f32
    %233 = vector.broadcast %cst_86 : f32 to vector<8x128xf32>
    %234 = arith.mulf %233, %232 : vector<8x128xf32>
    %cst_87 = arith.constant 5.000000e-01 : f32
    %235 = vector.broadcast %cst_87 : f32 to vector<8x128xf32>
    %236 = arith.addf %234, %235 : vector<8x128xf32>
    %237 = arith.mulf %226, %199 : vector<8x128xf32>
    %238 = arith.mulf %218, %228 : vector<8x128xf32>
    %239 = arith.addf %237, %238 : vector<8x128xf32>
    %240 = math.tanh %239 : vector<8x128xf32>
    %241 = arith.mulf %236, %240 : vector<8x128xf32>
    %242 = arith.index_cast %c5_i32 : i32 to index
    %c0_88 = arith.constant 0 : index
    %c0_89 = arith.constant 0 : index
    %243 = vector.load %arg6[%242, %c0_88, %c0_89] : memref<8x8x128xf32, #tpu.memory_space<vmem>>, vector<1x8x128xf32>
    %244 = vector.shape_cast %243 : vector<1x8x128xf32> to vector<8x128xf32>
    %245 = vector.shape_cast %241 : vector<8x128xf32> to vector<1x8x128xf32>
    tpu.vector_store %arg6[%242, %c0_88, %c0_89], %245 {strides = array<i32>} : memref<8x8x128xf32, #tpu.memory_space<vmem>>, vector<1x8x128xf32>,
    %c6_i32 = arith.constant 6 : i32
    %246 = arith.index_cast %c6_i32 : i32 to index
    %c0_90 = arith.constant 0 : index
    %c0_91 = arith.constant 0 : index
    %247 = vector.load %arg2[%246, %c0_90, %c0_91] : memref<8x8x512xf32, #tpu.memory_space<vmem>>, vector<1x8x512xf32>
    %248 = vector.shape_cast %247 : vector<1x8x512xf32> to vector<8x512xf32>
    %cst_92 = arith.constant dense<0.000000e+00> : vector<8x512xf32>
    %249 = tpu.matmul %241, %3, %cst_92 {dimension_numbers = #tpu.dot_dimension_numbers<[1], [0], [0], [1], [0, 0, 1, 1], [], []>} : vector<8x128xf32>, vector<128x512xf32>, vector<8x512xf32> -> vector<8x512xf32>
    %250 = arith.addf %248, %249 : vector<8x512xf32>
    %251 = vector.extract_strided_slice %250 {offsets = [0, 0], sizes = [8, 128], strides = [1, 1]} : vector<8x512xf32> to vector<8x128xf32>
    %cst_93 = arith.constant 5.000000e-01 : f32
    %252 = vector.broadcast %cst_93 : f32 to vector<8x128xf32>
    %253 = arith.mulf %252, %251 : vector<8x128xf32>
    %254 = math.tanh %253 : vector<8x128xf32>
    %cst_94 = arith.constant 5.000000e-01 : f32
    %255 = vector.broadcast %cst_94 : f32 to vector<8x128xf32>
    %256 = arith.mulf %255, %254 : vector<8x128xf32>
    %cst_95 = arith.constant 5.000000e-01 : f32
    %257 = vector.broadcast %cst_95 : f32 to vector<8x128xf32>
    %258 = arith.addf %256, %257 : vector<8x128xf32>
    %259 = vector.extract_strided_slice %250 {offsets = [0, 128], sizes = [8, 128], strides = [1, 1]} : vector<8x512xf32> to vector<8x128xf32>
    %cst_96 = arith.constant 5.000000e-01 : f32
    %260 = vector.broadcast %cst_96 : f32 to vector<8x128xf32>
    %261 = arith.mulf %260, %259 : vector<8x128xf32>
    %262 = math.tanh %261 : vector<8x128xf32>
    %cst_97 = arith.constant 5.000000e-01 : f32
    %263 = vector.broadcast %cst_97 : f32 to vector<8x128xf32>
    %264 = arith.mulf %263, %262 : vector<8x128xf32>
    %cst_98 = arith.constant 5.000000e-01 : f32
    %265 = vector.broadcast %cst_98 : f32 to vector<8x128xf32>
    %266 = arith.addf %264, %265 : vector<8x128xf32>
    %267 = vector.extract_strided_slice %250 {offsets = [0, 256], sizes = [8, 128], strides = [1, 1]} : vector<8x512xf32> to vector<8x128xf32>
    %268 = math.tanh %267 : vector<8x128xf32>
    %269 = vector.extract_strided_slice %250 {offsets = [0, 384], sizes = [8, 128], strides = [1, 1]} : vector<8x512xf32> to vector<8x128xf32>
    %cst_99 = arith.constant 5.000000e-01 : f32
    %270 = vector.broadcast %cst_99 : f32 to vector<8x128xf32>
    %271 = arith.mulf %270, %269 : vector<8x128xf32>
    %272 = math.tanh %271 : vector<8x128xf32>
    %cst_100 = arith.constant 5.000000e-01 : f32
    %273 = vector.broadcast %cst_100 : f32 to vector<8x128xf32>
    %274 = arith.mulf %273, %272 : vector<8x128xf32>
    %cst_101 = arith.constant 5.000000e-01 : f32
    %275 = vector.broadcast %cst_101 : f32 to vector<8x128xf32>
    %276 = arith.addf %274, %275 : vector<8x128xf32>
    %277 = arith.mulf %266, %239 : vector<8x128xf32>
    %278 = arith.mulf %258, %268 : vector<8x128xf32>
    %279 = arith.addf %277, %278 : vector<8x128xf32>
    %280 = math.tanh %279 : vector<8x128xf32>
    %281 = arith.mulf %276, %280 : vector<8x128xf32>
    %282 = arith.index_cast %c6_i32 : i32 to index
    %c0_102 = arith.constant 0 : index
    %c0_103 = arith.constant 0 : index
    %283 = vector.load %arg6[%282, %c0_102, %c0_103] : memref<8x8x128xf32, #tpu.memory_space<vmem>>, vector<1x8x128xf32>
    %284 = vector.shape_cast %283 : vector<1x8x128xf32> to vector<8x128xf32>
    %285 = vector.shape_cast %281 : vector<8x128xf32> to vector<1x8x128xf32>
    tpu.vector_store %arg6[%282, %c0_102, %c0_103], %285 {strides = array<i32>} : memref<8x8x128xf32, #tpu.memory_space<vmem>>, vector<1x8x128xf32>,
    %c7_i32 = arith.constant 7 : i32
    %286 = arith.index_cast %c7_i32 : i32 to index
    %c0_104 = arith.constant 0 : index
    %c0_105 = arith.constant 0 : index
    %287 = vector.load %arg2[%286, %c0_104, %c0_105] : memref<8x8x512xf32, #tpu.memory_space<vmem>>, vector<1x8x512xf32>
    %288 = vector.shape_cast %287 : vector<1x8x512xf32> to vector<8x512xf32>
    %cst_106 = arith.constant dense<0.000000e+00> : vector<8x512xf32>
    %289 = tpu.matmul %281, %3, %cst_106 {dimension_numbers = #tpu.dot_dimension_numbers<[1], [0], [0], [1], [0, 0, 1, 1], [], []>} : vector<8x128xf32>, vector<128x512xf32>, vector<8x512xf32> -> vector<8x512xf32>
    %290 = arith.addf %288, %289 : vector<8x512xf32>
    %291 = vector.extract_strided_slice %290 {offsets = [0, 0], sizes = [8, 128], strides = [1, 1]} : vector<8x512xf32> to vector<8x128xf32>
    %cst_107 = arith.constant 5.000000e-01 : f32
    %292 = vector.broadcast %cst_107 : f32 to vector<8x128xf32>
    %293 = arith.mulf %292, %291 : vector<8x128xf32>
    %294 = math.tanh %293 : vector<8x128xf32>
    %cst_108 = arith.constant 5.000000e-01 : f32
    %295 = vector.broadcast %cst_108 : f32 to vector<8x128xf32>
    %296 = arith.mulf %295, %294 : vector<8x128xf32>
    %cst_109 = arith.constant 5.000000e-01 : f32
    %297 = vector.broadcast %cst_109 : f32 to vector<8x128xf32>
    %298 = arith.addf %296, %297 : vector<8x128xf32>
    %299 = vector.extract_strided_slice %290 {offsets = [0, 128], sizes = [8, 128], strides = [1, 1]} : vector<8x512xf32> to vector<8x128xf32>
    %cst_110 = arith.constant 5.000000e-01 : f32
    %300 = vector.broadcast %cst_110 : f32 to vector<8x128xf32>
    %301 = arith.mulf %300, %299 : vector<8x128xf32>
    %302 = math.tanh %301 : vector<8x128xf32>
    %cst_111 = arith.constant 5.000000e-01 : f32
    %303 = vector.broadcast %cst_111 : f32 to vector<8x128xf32>
    %304 = arith.mulf %303, %302 : vector<8x128xf32>
    %cst_112 = arith.constant 5.000000e-01 : f32
    %305 = vector.broadcast %cst_112 : f32 to vector<8x128xf32>
    %306 = arith.addf %304, %305 : vector<8x128xf32>
    %307 = vector.extract_strided_slice %290 {offsets = [0, 256], sizes = [8, 128], strides = [1, 1]} : vector<8x512xf32> to vector<8x128xf32>
    %308 = math.tanh %307 : vector<8x128xf32>
    %309 = vector.extract_strided_slice %290 {offsets = [0, 384], sizes = [8, 128], strides = [1, 1]} : vector<8x512xf32> to vector<8x128xf32>
    %cst_113 = arith.constant 5.000000e-01 : f32
    %310 = vector.broadcast %cst_113 : f32 to vector<8x128xf32>
    %311 = arith.mulf %310, %309 : vector<8x128xf32>
    %312 = math.tanh %311 : vector<8x128xf32>
    %cst_114 = arith.constant 5.000000e-01 : f32
    %313 = vector.broadcast %cst_114 : f32 to vector<8x128xf32>
    %314 = arith.mulf %313, %312 : vector<8x128xf32>
    %cst_115 = arith.constant 5.000000e-01 : f32
    %315 = vector.broadcast %cst_115 : f32 to vector<8x128xf32>
    %316 = arith.addf %314, %315 : vector<8x128xf32>
    %317 = arith.mulf %306, %279 : vector<8x128xf32>
    %318 = arith.mulf %298, %308 : vector<8x128xf32>
    %319 = arith.addf %317, %318 : vector<8x128xf32>
    %320 = math.tanh %319 : vector<8x128xf32>
    %321 = arith.mulf %316, %320 : vector<8x128xf32>
    %322 = arith.index_cast %c7_i32 : i32 to index
    %c0_116 = arith.constant 0 : index
    %c0_117 = arith.constant 0 : index
    %323 = vector.load %arg6[%322, %c0_116, %c0_117] : memref<8x8x128xf32, #tpu.memory_space<vmem>>, vector<1x8x128xf32>
    %324 = vector.shape_cast %323 : vector<1x8x128xf32> to vector<8x128xf32>
    %325 = vector.shape_cast %321 : vector<8x128xf32> to vector<1x8x128xf32>
    tpu.vector_store %arg6[%322, %c0_116, %c0_117], %325 {strides = array<i32>} : memref<8x8x128xf32, #tpu.memory_space<vmem>>, vector<1x8x128xf32>,
    %c8_i32 = arith.constant 8 : i32
    %c0_118 = arith.constant 0 : index
    %c0_119 = arith.constant 0 : index
    %326 = vector.load %arg8[%c0_118, %c0_119] : memref<8x128xf32, #tpu.memory_space<vmem>>, vector<8x128xf32>
    tpu.vector_store %arg8[%c0_118, %c0_119], %321 {strides = array<i32>} : memref<8x128xf32, #tpu.memory_space<vmem>>, vector<8x128xf32>,
    %c0_120 = arith.constant 0 : index
    %c0_121 = arith.constant 0 : index
    %327 = vector.load %arg9[%c0_120, %c0_121] : memref<8x128xf32, #tpu.memory_space<vmem>>, vector<8x128xf32>
    tpu.vector_store %arg9[%c0_120, %c0_121], %319 {strides = array<i32>} : memref<8x128xf32, #tpu.memory_space<vmem>>, vector<8x128xf32>,
    %c0_i32_122 = arith.constant 0 : i32
    %328 = arith.cmpi eq, %arg1, %c0_i32_122 : i32
    %329 = arith.extui %328 : i1 to i32
    %c0_i32_123 = arith.constant 0 : i32
    %330 = arith.cmpi ne, %329, %c0_i32_123 : i32
    scf.if %330 {
      %c0_124 = arith.constant 0 : index
      %c0_125 = arith.constant 0 : index
      %331 = vector.load %arg9[%c0_124, %c0_125] : memref<8x128xf32, #tpu.memory_space<vmem>>, vector<8x128xf32>
      %c0_126 = arith.constant 0 : index
      %c0_127 = arith.constant 0 : index
      %332 = vector.load %arg7[%c0_126, %c0_127] : memref<8x128xf32, #tpu.memory_space<vmem>>, vector<8x128xf32>
      tpu.vector_store %arg7[%c0_126, %c0_127], %331 {strides = array<i32>} : memref<8x128xf32, #tpu.memory_space<vmem>>, vector<8x128xf32>,
    } else {
    }
    return
  }
  func.func @transform_0(%arg0: i32, %arg1: i32) -> (i32, i32, i32) {
    %c0_i32 = arith.constant 0 : i32
    %c0_i32_0 = arith.constant 0 : i32
    return %arg1, %arg0, %c0_i32 : i32, i32, i32
  }
  func.func @transform_1(%arg0: i32, %arg1: i32) -> (i32, i32) {
    %c0_i32 = arith.constant 0 : i32
    %c0_i32_0 = arith.constant 0 : i32
    return %arg0, %c0_i32 : i32, i32
  }
  func.func @transform_2(%arg0: i32, %arg1: i32) -> (i32, i32) {
    %c0_i32 = arith.constant 0 : i32
    %c0_i32_0 = arith.constant 0 : i32
    return %arg0, %c0_i32 : i32, i32
  }
  func.func @transform_4(%arg0: i32, %arg1: i32) -> (i32, i32, i32) {
    %c0_i32 = arith.constant 0 : i32
    %c0_i32_0 = arith.constant 0 : i32
    return %arg1, %arg0, %c0_i32 : i32, i32, i32
  }
  func.func @transform_5(%arg0: i32, %arg1: i32) -> (i32, i32) {
    %c0_i32 = arith.constant 0 : i32
    %c0_i32_0 = arith.constant 0 : i32
    return %arg0, %c0_i32 : i32, i32
  }
}

</mosaic_0001>

<bundles_post_ra>
// kernel: _decoder_impl.1
= control target key start
LH: loop header
LB: loop body
LE: loop exit
PB: predicated region body
PF: predicated region fallthrough
CT: control target
= control target key end

     0   :  { %s2803_s0 = inlined_call_operand.vmem [shape: f32[8,8,512], index: 0, kind: input, shape index: {}]   ;;  %s2804_s1 = inlined_call_operand.vmem [shape: f32[8,128], index: 1, kind: input, shape index: {}]   ;;  %s2805_s2 = inlined_call_operand.vmem [shape: f32[8,128], index: 2, kind: input, shape index: {}]   ;;  %s2806_s3 = inlined_call_operand.vmem [shape: f32[128,512], index: 3, kind: input, shape index: {}]   ;;  %s2807_s4 = inlined_call_operand.vmem [shape: f32[8,8,128], index: 4, kind: output, shape index: {0}]   ;;  %s2808_s5 = inlined_call_operand.vmem [shape: f32[8,128], index: 5, kind: output, shape index: {1}]  }
   0x1   :  { %v1805_v0 = vld [vmem:[%s2806_s3] sm:$0xff]  ;;  %v1810_v1 = vld [vmem:[%s2806_s3 + $0x8] sm:$0xff]  ;;  %v1815_v2 = vld [vmem:[%s2806_s3 + $0x10] sm:$0xff] }
   0x2   :  { %2855 = vst [vmem:[#allocation8_spill] sm:$0xff] %v1805_v0  ;;  %2856 = vst [vmem:[#allocation9_spill] sm:$0xff] %v1810_v1  ;;  %v1820_v3 = vld [vmem:[%s2806_s3 + $0x18] sm:$0xff]  ;;  %v1825_v4 = vld [vmem:[%s2806_s3 + $0x20] sm:$0xff] }
   0x3   :  { %2857 = vst [vmem:[#allocation10_spill] sm:$0xff] %v1815_v2  ;;  %2858 = vst [vmem:[#allocation11_spill] sm:$0xff] %v1820_v3  ;;  %v1830_v5 = vld [vmem:[%s2806_s3 + $0x28] sm:$0xff]  ;;  %v1835_v6 = vld [vmem:[%s2806_s3 + $0x30] sm:$0xff] }
   0x4   :  { %2859 = vst [vmem:[#allocation12_spill] sm:$0xff] %v1825_v4  ;;  %2860 = vst [vmem:[#allocation13_spill] sm:$0xff] %v1830_v5  ;;  %v1840_v7 = vld [vmem:[%s2806_s3 + $0x38] sm:$0xff]  ;;  %v1845_v8 = vld [vmem:[%s2806_s3 + $0x40] sm:$0xff] }
   0x5   :  { %2861 = vst [vmem:[#allocation14_spill] sm:$0xff] %v1835_v6  ;;  %2862 = vst [vmem:[#allocation15_spill] sm:$0xff] %v1840_v7  ;;  %v1850_v9 = vld [vmem:[%s2806_s3 + $0x48] sm:$0xff]  ;;  %v1855_v10 = vld [vmem:[%s2806_s3 + $0x50] sm:$0xff] }
   0x6   :  { %2863 = vst [vmem:[#allocation16_spill] sm:$0xff] %v1845_v8  ;;  %2864 = vst [vmem:[#allocation17_spill] sm:$0xff] %v1850_v9  ;;  %v1860_v11 = vld [vmem:[%s2806_s3 + $0x58] sm:$0xff]  ;;  %v1865_v12 = vld [vmem:[%s2806_s3 + $0x60] sm:$0xff] }
   0x7   :  { %2865 = vst [vmem:[#allocation18_spill] sm:$0xff] %v1855_v10  ;;  %2866 = vst [vmem:[#allocation19_spill] sm:$0xff] %v1860_v11  ;;  %v1870_v13 = vld [vmem:[%s2806_s3 + $0x68] sm:$0xff]  ;;  %v1875_v14 = vld [vmem:[%s2806_s3 + $0x70] sm:$0xff] }
   0x8   :  { %2867 = vst [vmem:[#allocation20_spill] sm:$0xff] %v1865_v12  ;;  %2868 = vst [vmem:[#allocation21_spill] sm:$0xff] %v1870_v13  ;;  %v1880_v15 = vld [vmem:[%s2806_s3 + $0x78] sm:$0xff]  ;;  %v1885_v16 = vld [vmem:[%s2806_s3 + $0x80] sm:$0xff] }
   0x9   :  { %2869 = vst [vmem:[#allocation22_spill] sm:$0xff] %v1875_v14  ;;  %2870 = vst [vmem:[#allocation23_spill] sm:$0xff] %v1880_v15  ;;  %v1890_v17 = vld [vmem:[%s2806_s3 + $0x88] sm:$0xff]  ;;  %v1895_v18 = vld [vmem:[%s2806_s3 + $0x90] sm:$0xff] }
   0xa   :  { %v1900_v19 = vld [vmem:[%s2806_s3 + $0x98] sm:$0xff]  ;;  %v1905_v20 = vld [vmem:[%s2806_s3 + $0xa0] sm:$0xff]  ;;  %v1910_v21 = vld [vmem:[%s2806_s3 + $0xa8] sm:$0xff] }
   0xb   :  { %2871 = vst [vmem:[#allocation24_spill] sm:$0xff] %v1910_v21  ;;  %v1915_v22 = vld [vmem:[%s2806_s3 + $0xb0] sm:$0xff]  ;;  %v1920_v23 = vld [vmem:[%s2806_s3 + $0xb8] sm:$0xff]  ;;  %v1925_v24 = vld [vmem:[%s2806_s3 + $0xc0] sm:$0xff] }
   0xc   :  { %v1930_v25 = vld [vmem:[%s2806_s3 + $0xc8] sm:$0xff]  ;;  %v1935_v26 = vld [vmem:[%s2806_s3 + $0xd0] sm:$0xff]  ;;  %v1940_v27 = vld [vmem:[%s2806_s3 + $0xd8] sm:$0xff] }
   0xd   :  { %v1945_v28 = vld [vmem:[%s2806_s3 + $0xe0] sm:$0xff]  ;;  %v1950_v29 = vld [vmem:[%s2806_s3 + $0xe8] sm:$0xff]  ;;  %v1955_v30 = vld [vmem:[%s2806_s3 + $0xf0] sm:$0xff] }
   0xe   :  { %v1960_v31 = vld [vmem:[%s2806_s3 + $0xf8] sm:$0xff]  ;;  %v1965_v32 = vld [vmem:[%s2806_s3 + $0x100] sm:$0xff]  ;;  %v1970_v33 = vld [vmem:[%s2806_s3 + $0x108] sm:$0xff] }
   0xf   :  { %v1975_v34 = vld [vmem:[%s2806_s3 + $0x110] sm:$0xff]  ;;  %v1980_v35 = vld [vmem:[%s2806_s3 + $0x118] sm:$0xff]  ;;  %v1985_v36 = vld [vmem:[%s2806_s3 + $0x120] sm:$0xff] }
  0x10   :  { %v1990_v37 = vld [vmem:[%s2806_s3 + $0x128] sm:$0xff]  ;;  %v1995_v38 = vld [vmem:[%s2806_s3 + $0x130] sm:$0xff]  ;;  %v2000_v39 = vld [vmem:[%s2806_s3 + $0x138] sm:$0xff] }
  0x11   :  { %v2005_v40 = vld [vmem:[%s2806_s3 + $0x140] sm:$0xff]  ;;  %v2010_v41 = vld [vmem:[%s2806_s3 + $0x148] sm:$0xff]  ;;  %v2015_v42 = vld [vmem:[%s2806_s3 + $0x150] sm:$0xff] }
  0x12   :  { %v2020_v43 = vld [vmem:[%s2806_s3 + $0x158] sm:$0xff]  ;;  %v2025_v44 = vld [vmem:[%s2806_s3 + $0x160] sm:$0xff]  ;;  %v2030_v45 = vld [vmem:[%s2806_s3 + $0x168] sm:$0xff] }
  0x13   :  { %v2035_v46 = vld [vmem:[%s2806_s3 + $0x170] sm:$0xff]  ;;  %v2040_v47 = vld [vmem:[%s2806_s3 + $0x178] sm:$0xff]  ;;  %v2045_v48 = vld [vmem:[%s2806_s3 + $0x180] sm:$0xff] }
  0x14   :  { %v2050_v49 = vld [vmem:[%s2806_s3 + $0x188] sm:$0xff]  ;;  %v2055_v50 = vld [vmem:[%s2806_s3 + $0x190] sm:$0xff]  ;;  %v2060_v51 = vld [vmem:[%s2806_s3 + $0x198] sm:$0xff] }
  0x15   :  { %v2065_v52 = vld [vmem:[%s2806_s3 + $0x1a0] sm:$0xff]  ;;  %v2070_v53 = vld [vmem:[%s2806_s3 + $0x1a8] sm:$0xff]  ;;  %v2075_v54 = vld [vmem:[%s2806_s3 + $0x1b0] sm:$0xff] }
  0x16   :  { %v2080_v55 = vld [vmem:[%s2806_s3 + $0x1b8] sm:$0xff]  ;;  %v2085_v56 = vld [vmem:[%s2806_s3 + $0x1c0] sm:$0xff]  ;;  %v2090_v57 = vld [vmem:[%s2806_s3 + $0x1c8] sm:$0xff] }
  0x17   :  { %v2095_v58 = vld [vmem:[%s2806_s3 + $0x1d0] sm:$0xff]  ;;  %v2100_v59 = vld [vmem:[%s2806_s3 + $0x1d8] sm:$0xff]  ;;  %v2105_v60 = vld [vmem:[%s2806_s3 + $0x1e0] sm:$0xff] }
  0x18   :  { %v2110_v61 = vld [vmem:[%s2806_s3 + $0x1e8] sm:$0xff]  ;;  %v2115_v62 = vld [vmem:[%s2806_s3 + $0x1f0] sm:$0xff]  ;;  %v2120_v63 = vld [vmem:[%s2806_s3 + $0x1f8] sm:$0xff] }
  0x19   :  { %2872 = vst [vmem:[#allocation25_spill] sm:$0xff] %v2110_v61  ;;  %2873 = vst [vmem:[#allocation26_spill] sm:$0xff] %v2120_v63 }
  0x1a   :  { %189 = vsyncadd [#allocation5], 8192 }
  0x1b   :  { %1769 = dma.done.wait [#allocation5], 8192 }
  0x1c   :  { %1770 = vsyncadd [#allocation5], 4294959104  ;;  %268 = vmatprep.subr.mxu0 %v2110_v61  ;;  %339 = vmatprep.subr.mxu1 %v2120_v63 }
  0x1d   :  { %269 = vmatpush1.msra.mxu0 %v2105_v60  ;;  %340 = vmatpush1.msra.mxu1 %v2115_v62 }
  0x1e   :  { %270 = vmatprep.subr.mxu0 %v2090_v57  ;;  %341 = vmatprep.subr.mxu1 %v2100_v59 }
  0x1f   :  { %271 = vmatpush1.msra.mxu0 %v2085_v56  ;;  %342 = vmatpush1.msra.mxu1 %v2095_v58 }
  0x20   :  { %272 = vmatprep.subr.mxu0 %v2070_v53  ;;  %343 = vmatprep.subr.mxu1 %v2080_v55 }
  0x21   :  { %273 = vmatpush1.msra.mxu0 %v2065_v52  ;;  %344 = vmatpush1.msra.mxu1 %v2075_v54 }
  0x22   :  { %274 = vmatprep.subr.mxu0 %v2050_v49  ;;  %345 = vmatprep.subr.mxu1 %v2060_v51 }
  0x23   :  { %275 = vmatpush1.msra.mxu0 %v2045_v48  ;;  %346 = vmatpush1.msra.mxu1 %v2055_v50 }
  0x24   :  { %276 = vmatprep.subr.mxu0 %v2030_v45  ;;  %347 = vmatprep.subr.mxu1 %v2040_v47 }
  0x25   :  { %277 = vmatpush1.msra.mxu0 %v2025_v44  ;;  %348 = vmatpush1.msra.mxu1 %v2035_v46 }
  0x26   :  { %278 = vmatprep.subr.mxu0 %v2010_v41  ;;  %349 = vmatprep.subr.mxu1 %v2020_v43 }
  0x27   :  { %279 = vmatpush1.msra.mxu0 %v2005_v40  ;;  %350 = vmatpush1.msra.mxu1 %v2015_v42 }
  0x28   :  { %280 = vmatprep.subr.mxu0 %v1990_v37  ;;  %351 = vmatprep.subr.mxu1 %v2000_v39 }
  0x29   :  { %281 = vmatpush1.msra.mxu0 %v1985_v36  ;;  %352 = vmatpush1.msra.mxu1 %v1995_v38 }
  0x2a   :  { %282 = vmatprep.subr.mxu0 %v1970_v33  ;;  %353 = vmatprep.subr.mxu1 %v1980_v35 }
  0x2b   :  { %283 = vmatpush1.msra.mxu0 %v1965_v32  ;;  %354 = vmatpush1.msra.mxu1 %v1975_v34 }
  0x2c   :  { %284 = vmatprep.subr.mxu0 %v1950_v29  ;;  %355 = vmatprep.subr.mxu1 %v1960_v31 }
  0x2d   :  { %285 = vmatpush1.msra.mxu0 %v1945_v28  ;;  %356 = vmatpush1.msra.mxu1 %v1955_v30 }
  0x2e   :  { %286 = vmatprep.subr.mxu0 %v1930_v25  ;;  %357 = vmatprep.subr.mxu1 %v1940_v27 }
  0x2f   :  { %287 = vmatpush1.msra.mxu0 %v1925_v24  ;;  %358 = vmatpush1.msra.mxu1 %v1935_v26 }
  0x30   :  { %288 = vmatprep.subr.mxu0 %v1910_v21  ;;  %359 = vmatprep.subr.mxu1 %v1920_v23  ;;  %v2813_v21 = vmov 0.0  }
  0x31   :  { %289 = vmatpush1.msra.mxu0 %v1905_v20  ;;  %360 = vmatpush1.msra.mxu1 %v1915_v22 }
  0x32   :  { %290 = vmatprep.subr.mxu0 %v1890_v17  ;;  %361 = vmatprep.subr.mxu1 %v1900_v19 }
  0x33   :  { %291 = vmatpush1.msra.mxu0 %v1885_v16  ;;  %362 = vmatpush1.msra.mxu1 %v1895_v18 }
  0x34   :  { %292 = vmatprep.subr.mxu0 %v1870_v13  ;;  %363 = vmatprep.subr.mxu1 %v1880_v15 }
  0x35   :  { %293 = vmatpush1.msra.mxu0 %v1865_v12  ;;  %332 = vmatprep.mubr.f32.mxu0 %v2813_v21  ;;  %v194_v12 = vld [vmem:[%s2804_s1] sm:$0xff] }
  0x36   :  { %294 = vmatprep.subr.mxu0 %v1850_v9  ;;  %364 = vmatpush1.msra.mxu1 %v1875_v14 }
  0x37   :  { %295 = vmatpush1.msra.mxu0 %v1845_v8  ;;  %365 = vmatprep.subr.mxu1 %v1860_v11 }
  0x38   :  { %296 = vmatprep.subr.mxu0 %v1830_v5  ;;  %366 = vmatpush1.msra.mxu1 %v1855_v10 }
  0x39   :  { %297 = vmatpush1.msra.mxu0 %v1825_v4  ;;  %367 = vmatprep.subr.mxu1 %v1840_v7 }
  0x3a   :  { %298 = vmatprep.subr.mxu0 %v1810_v1  ;;  %368 = vmatpush1.msra.mxu1 %v1835_v6 }
  0x3b   :  { %299 = vmatpush1.msra.mxu0 %v1805_v0  ;;  %369 = vmatprep.subr.mxu1 %v1820_v3 }
  0x3c   :  { %333 = vmatmul.mubr.f32.vlgmr.msra.gmra.mxu0 %v194_v12  ;;  %370 = vmatpush1.msra.mxu1 %v1815_v2 }
  0x3d   :  { %403 = vmatprep.mubr.f32.mxu1 %v2813_v21  ;;  %438 = vmatprep.subr.mxu0 %v2110_v61  ;;  %v2875_v21 = vld [vmem:[#allocation20_spill] sm:$0xff] }
  0x3e   :  { %404 = vmatmul.mubr.f32.vlgmr.msra.gmra.mxu1 %v194_v12  ;;  %509 = vmatprep.subr.mxu1 %v2120_v63  ;;  %v2874_v12 = vld [vmem:[#allocation24_spill] sm:$0xff] }
  0x3f   :  { %439 = vmatpush1.msra.mxu0 %v2105_v60  ;;  %510 = vmatpush1.msra.mxu1 %v2115_v62 }
  0x40   :  { %440 = vmatprep.subr.mxu0 %v2090_v57  ;;  %511 = vmatprep.subr.mxu1 %v2100_v59 }
  0x41   :  { %441 = vmatpush1.msra.mxu0 %v2085_v56  ;;  %512 = vmatpush1.msra.mxu1 %v2095_v58 }
  0x42   :  { %442 = vmatprep.subr.mxu0 %v2070_v53  ;;  %513 = vmatprep.subr.mxu1 %v2080_v55 }
  0x43   :  { %443 = vmatpush1.msra.mxu0 %v2065_v52  ;;  %514 = vmatpush1.msra.mxu1 %v2075_v54 }
  0x44   :  { %444 = vmatprep.subr.mxu0 %v2050_v49  ;;  %515 = vmatprep.subr.mxu1 %v2060_v51 }
  0x45   :  { %445 = vmatpush1.msra.mxu0 %v2045_v48  ;;  %516 = vmatpush1.msra.mxu1 %v2055_v50 }
  0x46   :  { %446 = vmatprep.subr.mxu0 %v2030_v45  ;;  %517 = vmatprep.subr.mxu1 %v2040_v47 }
  0x47   :  { %447 = vmatpush1.msra.mxu0 %v2025_v44  ;;  %518 = vmatpush1.msra.mxu1 %v2035_v46 }
  0x48   :  { %448 = vmatprep.subr.mxu0 %v2010_v41  ;;  %519 = vmatprep.subr.mxu1 %v2020_v43 }
  0x49   :  { %449 = vmatpush1.msra.mxu0 %v2005_v40  ;;  %520 = vmatpush1.msra.mxu1 %v2015_v42 }
  0x4a   :  { %450 = vmatprep.subr.mxu0 %v1990_v37  ;;  %521 = vmatprep.subr.mxu1 %v2000_v39 }
  0x4b   :  { %451 = vmatpush1.msra.mxu0 %v1985_v36  ;;  %522 = vmatpush1.msra.mxu1 %v1995_v38 }
  0x4c   :  { %452 = vmatprep.subr.mxu0 %v1970_v33  ;;  %523 = vmatprep.subr.mxu1 %v1980_v35 }
  0x4d   :  { %453 = vmatpush1.msra.mxu0 %v1965_v32  ;;  %524 = vmatpush1.msra.mxu1 %v1975_v34 }
  0x4e   :  { %454 = vmatprep.subr.mxu0 %v1950_v29  ;;  %525 = vmatprep.subr.mxu1 %v1960_v31 }
  0x4f   :  { %455 = vmatpush1.msra.mxu0 %v1945_v28  ;;  %526 = vmatpush1.msra.mxu1 %v1955_v30 }
  0x50   :  { %456 = vmatprep.subr.mxu0 %v1930_v25  ;;  %527 = vmatprep.subr.mxu1 %v1940_v27 }
  0x51   :  { %457 = vmatpush1.msra.mxu0 %v1925_v24  ;;  %528 = vmatpush1.msra.mxu1 %v1935_v26 }
  0x52   :  { %458 = vmatprep.subr.mxu0 %v2874_v12  ;;  %529 = vmatprep.subr.mxu1 %v1920_v23 }
  0x53   :  { %459 = vmatpush1.msra.mxu0 %v1905_v20  ;;  %530 = vmatpush1.msra.mxu1 %v1915_v22 }
  0x54   :  { %460 = vmatprep.subr.mxu0 %v1890_v17  ;;  %531 = vmatprep.subr.mxu1 %v1900_v19 }
  0x55   :  { %461 = vmatpush1.msra.mxu0 %v1885_v16  ;;  %532 = vmatpush1.msra.mxu1 %v1895_v18 }
  0x56   :  { %462 = vmatprep.subr.mxu0 %v1870_v13  ;;  %533 = vmatprep.subr.mxu1 %v1880_v15 }
  0x57   :  { %463 = vmatpush1.msra.mxu0 %v2875_v21  ;;  %534 = vmatpush1.msra.mxu1 %v1875_v14 }
  0x58   :  { %464 = vmatprep.subr.mxu0 %v1850_v9  ;;  %535 = vmatprep.subr.mxu1 %v1860_v11  ;;  %v2876_v9 = vmov 0.0  }
  0x59   :  { %465 = vmatpush1.msra.mxu0 %v1845_v8  ;;  %536 = vmatpush1.msra.mxu1 %v1855_v10  ;;  %v267_v10 = vld [vmem:[%s2803_s0 + $0x18] sm:$0xff] }
  0x5a   :  { %466 = vmatprep.subr.mxu0 %v1830_v5  ;;  %537 = vmatprep.subr.mxu1 %v1840_v7 }
  0x5b   :  { %467 = vmatpush1.msra.mxu0 %v1825_v4  ;;  %538 = vmatpush1.msra.mxu1 %v1835_v6  ;;  %v264_v6 = vld [vmem:[%s2803_s0] sm:$0xff] }
  0x5c   :  { %468 = vmatprep.subr.mxu0 %v1810_v1  ;;  %539 = vmatprep.subr.mxu1 %v1820_v3  ;;  %v265_v3 = vld [vmem:[%s2803_s0 + $0x8] sm:$0xff] }
  0x5d   :  { %469 = vmatpush1.msra.mxu0 %v1805_v0  ;;  %502 = vmatprep.mubr.f32.mxu0 %v2876_v9 }
  0x5e   :  { %540 = vmatpush1.msra.mxu1 %v1815_v2  ;;  %573 = vmatprep.mubr.f32.mxu1 %v2876_v9  ;;  %v266_v2 = vld [vmem:[%s2803_s0 + $0x10] sm:$0xff] }
  0x5f   :  { %609 = vmatprep.subr.mxu0 %v2110_v61  ;;  %680 = vmatprep.subr.mxu1 %v2120_v63 }
  0xfc   :  { %v334_v4 = vpop.f32.mrf.mxu0 }
  0xfd   :  { %v410_v0 = vadd.f32 %v334_v4, %v264_v6 }
  0xfe   :  { %v336_v1 = vpop.f32.mrf.mxu0  ;;  %v405_v9 = vpop.f32.mrf.mxu1 }
  0xff   :  { %v414_v7 = vmul.f32 0.5, %v410_v0  ;;  %v411_v61 = vadd.f32 %v336_v1, %v265_v3  ;;  %v412_v5 = vadd.f32 %v405_v9, %v266_v2  ;;  %v196_v1 = vld [vmem:[%s2805_s2] sm:$0xff] }
 0x100   :  { %v407_v8 = vpop.f32.mrf.mxu1 }
 0x101   :  { %1689 = vtanh.f32 %v414_v7  ;;  %v418_v63 = vmul.f32 0.5, %v411_v61  ;;  %v413_v11 = vadd.f32 %v407_v8, %v267_v10 }
 0x103   :  { %1691 = vtanh.f32 %v418_v63  ;;  %v423_v4 = vmul.f32 0.5, %v413_v11  ;;  %v2881_v63 = vld [vmem:[#allocation17_spill] sm:$0xff] }
 0x104   :  { %1693 = vtanh.f32 %v412_v5 }
 0x105   :  { %1695 = vtanh.f32 %v423_v4  ;;  %v2882_v4 = vld [vmem:[#allocation19_spill] sm:$0xff] }
 0x10e   :  { %v1690_v6 = vpop.eup %1689 }
 0x10f   :  { %v416_v14 = vmul.f32 0.5, %v1690_v6  ;;  %v2883_v6 = vld [vmem:[#allocation16_spill] sm:$0xff] }
 0x110   :  { %v1692_v21 = vpop.eup %1691 }
 0x111   :  { %v417_v15 = vadd.f32 0.5, %v416_v14  ;;  %v420_v13 = vmul.f32 0.5, %v1692_v21  ;;  %v1694_v0 = vpop.eup %1693  ;;  %v2878_v14 = vld [vmem:[#allocation23_spill] sm:$0xff]  ;;  %v2880_v21 = vld [vmem:[#allocation22_spill] sm:$0xff] }
 0x112   :  { %v1696_v8 = vpop.eup %1695 }
 0x113   :  { %v421_v2 = vadd.f32 0.5, %v420_v13  ;;  %v428_v5 = vmul.f32 %v1694_v0, %v417_v15  ;;  %v425_v9 = vmul.f32 0.5, %v1696_v8  ;;  %v2877_v13 = vld [vmem:[#allocation21_spill] sm:$0xff]  ;;  %v2879_v15 = vld [vmem:[#allocation20_spill] sm:$0xff]  ;;  %v2884_v0 = vld [vmem:[#allocation18_spill] sm:$0xff] }
 0x114   :  { %v2889_v8 = vld [vmem:[#allocation9_spill] sm:$0xff] }
 0x115   :  { %v427_v3 = vmul.f32 %v421_v2, %v196_v1  ;;  %v426_v10 = vadd.f32 0.5, %v425_v9  ;;  %v2885_v1 = vld [vmem:[#allocation13_spill] sm:$0xff]  ;;  %v2886_v2 = vld [vmem:[#allocation15_spill] sm:$0xff] }
 0x116   :  { %v2890_v9 = vld [vmem:[#allocation11_spill] sm:$0xff] }
 0x117   :  { %v2274_v7 = vadd.f32 %v428_v5, %v427_v3  ;;  %v2887_v3 = vld [vmem:[#allocation12_spill] sm:$0xff]  ;;  %v2888_v5 = vld [vmem:[#allocation14_spill] sm:$0xff] }
 0x119   :  { %1697 = vtanh.f32 %v2274_v7 }
 0x126   :  { %v1698_v11 = vpop.eup %1697 }
 0x127   :  { %v431_v61 = vmul.f32 %v1698_v11, %v426_v10  ;;  %v2891_v10 = vld [vmem:[#allocation8_spill] sm:$0xff]  ;;  %v2892_v11 = vmov 0.0  }
 0x129   :  { %432 = vst [vmem:[%s2807_s4] sm:$0xff] %v431_v61  ;;  %503 = vmatmul.mubr.f32.vlgmr.msra.gmra.mxu0 %v431_v61  ;;  %574 = vmatmul.mubr.f32.vlgmr.msra.gmra.mxu1 %v431_v61  ;;  %v2893_v61 = vld [vmem:[#allocation10_spill] sm:$0xff] }
 0x12a   :  { %610 = vmatpush1.msra.mxu0 %v2105_v60  ;;  %681 = vmatpush1.msra.mxu1 %v2115_v62 }
 0x12b   :  { %611 = vmatprep.subr.mxu0 %v2090_v57  ;;  %682 = vmatprep.subr.mxu1 %v2100_v59 }
 0x12c   :  { %612 = vmatpush1.msra.mxu0 %v2085_v56  ;;  %683 = vmatpush1.msra.mxu1 %v2095_v58 }
 0x12d   :  { %613 = vmatprep.subr.mxu0 %v2070_v53  ;;  %684 = vmatprep.subr.mxu1 %v2080_v55 }
 0x12e   :  { %614 = vmatpush1.msra.mxu0 %v2065_v52  ;;  %685 = vmatpush1.msra.mxu1 %v2075_v54 }
 0x12f   :  { %615 = vmatprep.subr.mxu0 %v2050_v49  ;;  %686 = vmatprep.subr.mxu1 %v2060_v51 }
 0x130   :  { %616 = vmatpush1.msra.mxu0 %v2045_v48  ;;  %687 = vmatpush1.msra.mxu1 %v2055_v50 }
 0x131   :  { %617 = vmatprep.subr.mxu0 %v2030_v45  ;;  %688 = vmatprep.subr.mxu1 %v2040_v47 }
 0x132   :  { %618 = vmatpush1.msra.mxu0 %v2025_v44  ;;  %689 = vmatpush1.msra.mxu1 %v2035_v46 }
 0x133   :  { %619 = vmatprep.subr.mxu0 %v2010_v41  ;;  %690 = vmatprep.subr.mxu1 %v2020_v43 }
 0x134   :  { %620 = vmatpush1.msra.mxu0 %v2005_v40  ;;  %691 = vmatpush1.msra.mxu1 %v2015_v42 }
 0x135   :  { %621 = vmatprep.subr.mxu0 %v1990_v37  ;;  %692 = vmatprep.subr.mxu1 %v2000_v39 }
 0x136   :  { %622 = vmatpush1.msra.mxu0 %v1985_v36  ;;  %693 = vmatpush1.msra.mxu1 %v1995_v38 }
 0x137   :  { %623 = vmatprep.subr.mxu0 %v1970_v33  ;;  %694 = vmatprep.subr.mxu1 %v1980_v35 }
 0x138   :  { %624 = vmatpush1.msra.mxu0 %v1965_v32  ;;  %695 = vmatpush1.msra.mxu1 %v1975_v34 }
 0x139   :  { %625 = vmatprep.subr.mxu0 %v1950_v29  ;;  %696 = vmatprep.subr.mxu1 %v1960_v31 }
 0x13a   :  { %626 = vmatpush1.msra.mxu0 %v1945_v28  ;;  %697 = vmatpush1.msra.mxu1 %v1955_v30 }
 0x13b   :  { %627 = vmatprep.subr.mxu0 %v1930_v25  ;;  %698 = vmatprep.subr.mxu1 %v1940_v27 }
 0x13c   :  { %628 = vmatpush1.msra.mxu0 %v1925_v24  ;;  %699 = vmatpush1.msra.mxu1 %v1935_v26 }
 0x13d   :  { %629 = vmatprep.subr.mxu0 %v2874_v12  ;;  %700 = vmatprep.subr.mxu1 %v1920_v23 }
 0x13e   :  { %630 = vmatpush1.msra.mxu0 %v1905_v20  ;;  %701 = vmatpush1.msra.mxu1 %v1915_v22 }
 0x13f   :  { %631 = vmatprep.subr.mxu0 %v1890_v17  ;;  %702 = vmatprep.subr.mxu1 %v1900_v19 }
 0x140   :  { %632 = vmatpush1.msra.mxu0 %v1885_v16  ;;  %703 = vmatpush1.msra.mxu1 %v1895_v18 }
 0x141   :  { %633 = vmatprep.subr.mxu0 %v2877_v13  ;;  %704 = vmatprep.subr.mxu1 %v2878_v14 }
 0x142   :  { %634 = vmatpush1.msra.mxu0 %v2879_v15  ;;  %705 = vmatpush1.msra.mxu1 %v2880_v21 }
 0x143   :  { %635 = vmatprep.subr.mxu0 %v2881_v63  ;;  %706 = vmatprep.subr.mxu1 %v2882_v4  ;;  %v1656_v4 = vld [vmem:[%s2803_s0 + $0x38] sm:$0xff] }
 0x144   :  { %636 = vmatpush1.msra.mxu0 %v2883_v6  ;;  %707 = vmatpush1.msra.mxu1 %v2884_v0  ;;  %v2894_v0 = vld [vmem:[#allocation25_spill] sm:$0xff] }
 0x145   :  { %637 = vmatprep.subr.mxu0 %v2885_v1  ;;  %708 = vmatprep.subr.mxu1 %v2886_v2  ;;  %v2895_v1 = vld [vmem:[#allocation26_spill] sm:$0xff] }
 0x146   :  { %638 = vmatpush1.msra.mxu0 %v2887_v3  ;;  %709 = vmatpush1.msra.mxu1 %v2888_v5  ;;  %v1653_v5 = vld [vmem:[%s2803_s0 + $0x20] sm:$0xff] }
 0x147   :  { %639 = vmatprep.subr.mxu0 %v2889_v8  ;;  %710 = vmatprep.subr.mxu1 %v2890_v9  ;;  %v1654_v9 = vld [vmem:[%s2803_s0 + $0x28] sm:$0xff] }
 0x148   :  { %640 = vmatpush1.msra.mxu0 %v2891_v10  ;;  %673 = vmatprep.mubr.f32.mxu0 %v2892_v11 }
 0x149   :  { %711 = vmatpush1.msra.mxu1 %v2893_v61  ;;  %744 = vmatprep.mubr.f32.mxu1 %v2892_v11  ;;  %v1655_v61 = vld [vmem:[%s2803_s0 + $0x30] sm:$0xff] }
 0x14a   :  { %780 = vmatprep.subr.mxu0 %v2894_v0  ;;  %851 = vmatprep.subr.mxu1 %v2895_v1 }
 0x1e9   :  { %v504_v3 = vpop.f32.mrf.mxu0  ;;  %v575_v0 = vpop.f32.mrf.mxu1 }
 0x1ea   :  { %v580_v10 = vadd.f32 %v1653_v5, %v504_v3  ;;  %v582_v11 = vadd.f32 %v1655_v61, %v575_v0 }
 0x1eb   :  { %v506_v8 = vpop.f32.mrf.mxu0  ;;  %v577_v63 = vpop.f32.mrf.mxu1 }
 0x1ec   :  { %v584_v2 = vmul.f32 0.5, %v580_v10  ;;  %v581_v6 = vadd.f32 %v1654_v9, %v506_v8  ;;  %v583_v21 = vadd.f32 %v1656_v4, %v577_v63  ;;  %v2900_v4 = vld [vmem:[#allocation17_spill] sm:$0xff] }
 0x1ee   :  { %1699 = vtanh.f32 %v584_v2  ;;  %v588_v1 = vmul.f32 0.5, %v581_v6  ;;  %v593_v3 = vmul.f32 0.5, %v583_v21 }
 0x1f0   :  { %1701 = vtanh.f32 %v588_v1 }
 0x1f1   :  { %1703 = vtanh.f32 %v582_v11 }
 0x1f2   :  { %1705 = vtanh.f32 %v593_v3  ;;  %v2901_v3 = vld [vmem:[#allocation19_spill] sm:$0xff] }
 0x1fb   :  { %v1700_v5 = vpop.eup %1699 }
 0x1fc   :  { %v586_v10 = vmul.f32 0.5, %v1700_v5  ;;  %v2902_v5 = vld [vmem:[#allocation16_spill] sm:$0xff] }
 0x1fd   :  { %v1702_v8 = vpop.eup %1701 }
 0x1fe   :  { %v587_v9 = vadd.f32 0.5, %v586_v10  ;;  %v590_v15 = vmul.f32 0.5, %v1702_v8  ;;  %v1704_v13 = vpop.eup %1703  ;;  %v2903_v10 = vld [vmem:[#allocation18_spill] sm:$0xff]  ;;  %v2904_v8 = vld [vmem:[#allocation13_spill] sm:$0xff] }
 0x1ff   :  { %v1706_v2 = vpop.eup %1705 }
 0x200   :  { %v591_v14 = vadd.f32 0.5, %v590_v15  ;;  %v598_v0 = vmul.f32 %v1704_v13, %v587_v9  ;;  %v595_v61 = vmul.f32 0.5, %v1706_v2  ;;  %v2897_v13 = vld [vmem:[#allocation23_spill] sm:$0xff]  ;;  %v2899_v15 = vld [vmem:[#allocation22_spill] sm:$0xff]  ;;  %v2908_v2 = vld [vmem:[#allocation9_spill] sm:$0xff] }
 0x201   :  { %v2905_v9 = vld [vmem:[#allocation15_spill] sm:$0xff] }
 0x202   :  { %v597_v6 = vmul.f32 %v591_v14, %v2274_v7  ;;  %v596_v11 = vadd.f32 0.5, %v595_v61  ;;  %v2896_v7 = vld [vmem:[#allocation21_spill] sm:$0xff]  ;;  %v2898_v14 = vld [vmem:[#allocation20_spill] sm:$0xff]  ;;  %v2909_v61 = vld [vmem:[#allocation11_spill] sm:$0xff] }
 0x204   :  { %v2359_v1 = vadd.f32 %v598_v0, %v597_v6  ;;  %v2906_v6 = vld [vmem:[#allocation12_spill] sm:$0xff]  ;;  %v2907_v0 = vld [vmem:[#allocation14_spill] sm:$0xff] }
 0x206   :  { %1707 = vtanh.f32 %v2359_v1 }
 0x213   :  { %v1708_v63 = vpop.eup %1707 }
 0x214   :  { %v601_v21 = vmul.f32 %v1708_v63, %v596_v11  ;;  %v2910_v11 = vld [vmem:[#allocation8_spill] sm:$0xff]  ;;  %v2911_v63 = vmov 0.0  }
 0x216   :  { %1657 = vst [vmem:[%s2807_s4 + $0x8] sm:$0xff] %v601_v21  ;;  %674 = vmatmul.mubr.f32.vlgmr.msra.gmra.mxu0 %v601_v21  ;;  %745 = vmatmul.mubr.f32.vlgmr.msra.gmra.mxu1 %v601_v21  ;;  %v2912_v21 = vld [vmem:[#allocation10_spill] sm:$0xff] }
 0x217   :  { %781 = vmatpush1.msra.mxu0 %v2105_v60  ;;  %852 = vmatpush1.msra.mxu1 %v2115_v62 }
 0x218   :  { %782 = vmatprep.subr.mxu0 %v2090_v57  ;;  %853 = vmatprep.subr.mxu1 %v2100_v59 }
 0x219   :  { %783 = vmatpush1.msra.mxu0 %v2085_v56  ;;  %854 = vmatpush1.msra.mxu1 %v2095_v58 }
 0x21a   :  { %784 = vmatprep.subr.mxu0 %v2070_v53  ;;  %855 = vmatprep.subr.mxu1 %v2080_v55 }
 0x21b   :  { %785 = vmatpush1.msra.mxu0 %v2065_v52  ;;  %856 = vmatpush1.msra.mxu1 %v2075_v54 }
 0x21c   :  { %786 = vmatprep.subr.mxu0 %v2050_v49  ;;  %857 = vmatprep.subr.mxu1 %v2060_v51 }
 0x21d   :  { %787 = vmatpush1.msra.mxu0 %v2045_v48  ;;  %858 = vmatpush1.msra.mxu1 %v2055_v50 }
 0x21e   :  { %788 = vmatprep.subr.mxu0 %v2030_v45  ;;  %859 = vmatprep.subr.mxu1 %v2040_v47 }
 0x21f   :  { %789 = vmatpush1.msra.mxu0 %v2025_v44  ;;  %860 = vmatpush1.msra.mxu1 %v2035_v46 }
 0x220   :  { %790 = vmatprep.subr.mxu0 %v2010_v41  ;;  %861 = vmatprep.subr.mxu1 %v2020_v43 }
 0x221   :  { %791 = vmatpush1.msra.mxu0 %v2005_v40  ;;  %862 = vmatpush1.msra.mxu1 %v2015_v42 }
 0x222   :  { %792 = vmatprep.subr.mxu0 %v1990_v37  ;;  %863 = vmatprep.subr.mxu1 %v2000_v39 }
 0x223   :  { %793 = vmatpush1.msra.mxu0 %v1985_v36  ;;  %864 = vmatpush1.msra.mxu1 %v1995_v38 }
 0x224   :  { %794 = vmatprep.subr.mxu0 %v1970_v33  ;;  %865 = vmatprep.subr.mxu1 %v1980_v35 }
 0x225   :  { %795 = vmatpush1.msra.mxu0 %v1965_v32  ;;  %866 = vmatpush1.msra.mxu1 %v1975_v34 }
 0x226   :  { %796 = vmatprep.subr.mxu0 %v1950_v29  ;;  %867 = vmatprep.subr.mxu1 %v1960_v31 }
 0x227   :  { %797 = vmatpush1.msra.mxu0 %v1945_v28  ;;  %868 = vmatpush1.msra.mxu1 %v1955_v30 }
 0x228   :  { %798 = vmatprep.subr.mxu0 %v1930_v25  ;;  %869 = vmatprep.subr.mxu1 %v1940_v27 }
 0x229   :  { %799 = vmatpush1.msra.mxu0 %v1925_v24  ;;  %870 = vmatpush1.msra.mxu1 %v1935_v26 }
 0x22a   :  { %800 = vmatprep.subr.mxu0 %v2874_v12  ;;  %871 = vmatprep.subr.mxu1 %v1920_v23 }
 0x22b   :  { %801 = vmatpush1.msra.mxu0 %v1905_v20  ;;  %872 = vmatpush1.msra.mxu1 %v1915_v22 }
 0x22c   :  { %802 = vmatprep.subr.mxu0 %v1890_v17  ;;  %873 = vmatprep.subr.mxu1 %v1900_v19 }
 0x22d   :  { %803 = vmatpush1.msra.mxu0 %v1885_v16  ;;  %874 = vmatpush1.msra.mxu1 %v1895_v18 }
 0x22e   :  { %804 = vmatprep.subr.mxu0 %v2896_v7  ;;  %875 = vmatprep.subr.mxu1 %v2897_v13 }
 0x22f   :  { %805 = vmatpush1.msra.mxu0 %v2898_v14  ;;  %876 = vmatpush1.msra.mxu1 %v2899_v15 }
 0x230   :  { %806 = vmatprep.subr.mxu0 %v2900_v4  ;;  %877 = vmatprep.subr.mxu1 %v2901_v3  ;;  %v1661_v3 = vld [vmem:[%s2803_s0 + $0x58] sm:$0xff] }
 0x231   :  { %807 = vmatpush1.msra.mxu0 %v2902_v5  ;;  %878 = vmatpush1.msra.mxu1 %v2903_v10  ;;  %v2913_v10 = vld [vmem:[#allocation25_spill] sm:$0xff] }
 0x232   :  { %808 = vmatprep.subr.mxu0 %v2904_v8  ;;  %879 = vmatprep.subr.mxu1 %v2905_v9  ;;  %v2914_v8 = vld [vmem:[#allocation26_spill] sm:$0xff] }
 0x233   :  { %809 = vmatpush1.msra.mxu0 %v2906_v6  ;;  %880 = vmatpush1.msra.mxu1 %v2907_v0  ;;  %v1658_v0 = vld [vmem:[%s2803_s0 + $0x40] sm:$0xff] }
 0x234   :  { %810 = vmatprep.subr.mxu0 %v2908_v2  ;;  %881 = vmatprep.subr.mxu1 %v2909_v61  ;;  %v1659_v61 = vld [vmem:[%s2803_s0 + $0x48] sm:$0xff] }
 0x235   :  { %811 = vmatpush1.msra.mxu0 %v2910_v11  ;;  %844 = vmatprep.mubr.f32.mxu0 %v2911_v63 }
 0x236   :  { %882 = vmatpush1.msra.mxu1 %v2912_v21  ;;  %915 = vmatprep.mubr.f32.mxu1 %v2911_v63  ;;  %v1660_v21 = vld [vmem:[%s2803_s0 + $0x50] sm:$0xff] }
 0x237   :  { %951 = vmatprep.subr.mxu0 %v2913_v10  ;;  %1022 = vmatprep.subr.mxu1 %v2914_v8 }
 0x2d6   :  { %v675_v6 = vpop.f32.mrf.mxu0  ;;  %v746_v10 = vpop.f32.mrf.mxu1 }
 0x2d7   :  { %v751_v11 = vadd.f32 %v1658_v0, %v675_v6  ;;  %v753_v63 = vadd.f32 %v1660_v21, %v746_v10 }
 0x2d8   :  { %v677_v2 = vpop.f32.mrf.mxu0  ;;  %v748_v4 = vpop.f32.mrf.mxu1 }
 0x2d9   :  { %v755_v9 = vmul.f32 0.5, %v751_v11  ;;  %v752_v5 = vadd.f32 %v1659_v61, %v677_v2  ;;  %v754_v15 = vadd.f32 %v1661_v3, %v748_v4  ;;  %v2919_v3 = vld [vmem:[#allocation17_spill] sm:$0xff] }
 0x2db   :  { %1709 = vtanh.f32 %v755_v9  ;;  %v759_v8 = vmul.f32 0.5, %v752_v5  ;;  %v764_v6 = vmul.f32 0.5, %v754_v15 }
 0x2dd   :  { %1711 = vtanh.f32 %v759_v8 }
 0x2de   :  { %1713 = vtanh.f32 %v753_v63 }
 0x2df   :  { %1715 = vtanh.f32 %v764_v6  ;;  %v2920_v6 = vld [vmem:[#allocation19_spill] sm:$0xff] }
 0x2e8   :  { %v1710_v0 = vpop.eup %1709 }
 0x2e9   :  { %v757_v11 = vmul.f32 0.5, %v1710_v0  ;;  %v2921_v0 = vld [vmem:[#allocation16_spill] sm:$0xff] }
 0x2ea   :  { %v1712_v2 = vpop.eup %1711 }
 0x2eb   :  { %v758_v61 = vadd.f32 0.5, %v757_v11  ;;  %v761_v14 = vmul.f32 0.5, %v1712_v2  ;;  %v1714_v7 = vpop.eup %1713  ;;  %v2922_v11 = vld [vmem:[#allocation18_spill] sm:$0xff]  ;;  %v2923_v2 = vld [vmem:[#allocation13_spill] sm:$0xff] }
 0x2ec   :  { %v1716_v9 = vpop.eup %1715 }
 0x2ed   :  { %v762_v13 = vadd.f32 0.5, %v761_v14  ;;  %v769_v10 = vmul.f32 %v1714_v7, %v758_v61  ;;  %v766_v21 = vmul.f32 0.5, %v1716_v9  ;;  %v2916_v7 = vld [vmem:[#allocation23_spill] sm:$0xff]  ;;  %v2918_v14 = vld [vmem:[#allocation22_spill] sm:$0xff]  ;;  %v2927_v9 = vld [vmem:[#allocation9_spill] sm:$0xff] }
 0x2ee   :  { %v2924_v61 = vld [vmem:[#allocation15_spill] sm:$0xff] }
 0x2ef   :  { %v768_v5 = vmul.f32 %v762_v13, %v2359_v1  ;;  %v767_v63 = vadd.f32 0.5, %v766_v21  ;;  %v2915_v1 = vld [vmem:[#allocation21_spill] sm:$0xff]  ;;  %v2917_v13 = vld [vmem:[#allocation20_spill] sm:$0xff]  ;;  %v2928_v21 = vld [vmem:[#allocation11_spill] sm:$0xff] }
 0x2f1   :  { %v2444_v8 = vadd.f32 %v769_v10, %v768_v5  ;;  %v2925_v5 = vld [vmem:[#allocation12_spill] sm:$0xff]  ;;  %v2926_v10 = vld [vmem:[#allocation14_spill] sm:$0xff] }
 0x2f3   :  { %1717 = vtanh.f32 %v2444_v8 }
 0x300   :  { %v1718_v4 = vpop.eup %1717 }
 0x301   :  { %v772_v15 = vmul.f32 %v1718_v4, %v767_v63  ;;  %v2929_v63 = vld [vmem:[#allocation8_spill] sm:$0xff]  ;;  %v2930_v4 = vmov 0.0  }
 0x303   :  { %1662 = vst [vmem:[%s2807_s4 + $0x10] sm:$0xff] %v772_v15  ;;  %845 = vmatmul.mubr.f32.vlgmr.msra.gmra.mxu0 %v772_v15  ;;  %916 = vmatmul.mubr.f32.vlgmr.msra.gmra.mxu1 %v772_v15  ;;  %v2931_v15 = vld [vmem:[#allocation10_spill] sm:$0xff] }
 0x304   :  { %952 = vmatpush1.msra.mxu0 %v2105_v60  ;;  %1023 = vmatpush1.msra.mxu1 %v2115_v62 }
 0x305   :  { %953 = vmatprep.subr.mxu0 %v2090_v57  ;;  %1024 = vmatprep.subr.mxu1 %v2100_v59 }
 0x306   :  { %954 = vmatpush1.msra.mxu0 %v2085_v56  ;;  %1025 = vmatpush1.msra.mxu1 %v2095_v58 }
 0x307   :  { %955 = vmatprep.subr.mxu0 %v2070_v53  ;;  %1026 = vmatprep.subr.mxu1 %v2080_v55 }
 0x308   :  { %956 = vmatpush1.msra.mxu0 %v2065_v52  ;;  %1027 = vmatpush1.msra.mxu1 %v2075_v54 }
 0x309   :  { %957 = vmatprep.subr.mxu0 %v2050_v49  ;;  %1028 = vmatprep.subr.mxu1 %v2060_v51 }
 0x30a   :  { %958 = vmatpush1.msra.mxu0 %v2045_v48  ;;  %1029 = vmatpush1.msra.mxu1 %v2055_v50 }
 0x30b   :  { %959 = vmatprep.subr.mxu0 %v2030_v45  ;;  %1030 = vmatprep.subr.mxu1 %v2040_v47 }
 0x30c   :  { %960 = vmatpush1.msra.mxu0 %v2025_v44  ;;  %1031 = vmatpush1.msra.mxu1 %v2035_v46 }
 0x30d   :  { %961 = vmatprep.subr.mxu0 %v2010_v41  ;;  %1032 = vmatprep.subr.mxu1 %v2020_v43 }
 0x30e   :  { %962 = vmatpush1.msra.mxu0 %v2005_v40  ;;  %1033 = vmatpush1.msra.mxu1 %v2015_v42 }
 0x30f   :  { %963 = vmatprep.subr.mxu0 %v1990_v37  ;;  %1034 = vmatprep.subr.mxu1 %v2000_v39 }
 0x310   :  { %964 = vmatpush1.msra.mxu0 %v1985_v36  ;;  %1035 = vmatpush1.msra.mxu1 %v1995_v38 }
 0x311   :  { %965 = vmatprep.subr.mxu0 %v1970_v33  ;;  %1036 = vmatprep.subr.mxu1 %v1980_v35 }
 0x312   :  { %966 = vmatpush1.msra.mxu0 %v1965_v32  ;;  %1037 = vmatpush1.msra.mxu1 %v1975_v34 }
 0x313   :  { %967 = vmatprep.subr.mxu0 %v1950_v29  ;;  %1038 = vmatprep.subr.mxu1 %v1960_v31 }
 0x314   :  { %968 = vmatpush1.msra.mxu0 %v1945_v28  ;;  %1039 = vmatpush1.msra.mxu1 %v1955_v30 }
 0x315   :  { %969 = vmatprep.subr.mxu0 %v1930_v25  ;;  %1040 = vmatprep.subr.mxu1 %v1940_v27 }
 0x316   :  { %970 = vmatpush1.msra.mxu0 %v1925_v24  ;;  %1041 = vmatpush1.msra.mxu1 %v1935_v26 }
 0x317   :  { %971 = vmatprep.subr.mxu0 %v2874_v12  ;;  %1042 = vmatprep.subr.mxu1 %v1920_v23 }
 0x318   :  { %972 = vmatpush1.msra.mxu0 %v1905_v20  ;;  %1043 = vmatpush1.msra.mxu1 %v1915_v22 }
 0x319   :  { %973 = vmatprep.subr.mxu0 %v1890_v17  ;;  %1044 = vmatprep.subr.mxu1 %v1900_v19 }
 0x31a   :  { %974 = vmatpush1.msra.mxu0 %v1885_v16  ;;  %1045 = vmatpush1.msra.mxu1 %v1895_v18 }
 0x31b   :  { %975 = vmatprep.subr.mxu0 %v2915_v1  ;;  %1046 = vmatprep.subr.mxu1 %v2916_v7 }
 0x31c   :  { %976 = vmatpush1.msra.mxu0 %v2917_v13  ;;  %1047 = vmatpush1.msra.mxu1 %v2918_v14 }
 0x31d   :  { %977 = vmatprep.subr.mxu0 %v2919_v3  ;;  %1048 = vmatprep.subr.mxu1 %v2920_v6  ;;  %v1666_v6 = vld [vmem:[%s2803_s0 + $0x78] sm:$0xff] }
 0x31e   :  { %978 = vmatpush1.msra.mxu0 %v2921_v0  ;;  %1049 = vmatpush1.msra.mxu1 %v2922_v11  ;;  %v2932_v11 = vld [vmem:[#allocation25_spill] sm:$0xff] }
 0x31f   :  { %979 = vmatprep.subr.mxu0 %v2923_v2  ;;  %1050 = vmatprep.subr.mxu1 %v2924_v61  ;;  %v2933_v2 = vld [vmem:[#allocation26_spill] sm:$0xff] }
 0x320   :  { %980 = vmatpush1.msra.mxu0 %v2925_v5  ;;  %1051 = vmatpush1.msra.mxu1 %v2926_v10  ;;  %v1663_v10 = vld [vmem:[%s2803_s0 + $0x60] sm:$0xff] }
 0x321   :  { %981 = vmatprep.subr.mxu0 %v2927_v9  ;;  %1052 = vmatprep.subr.mxu1 %v2928_v21  ;;  %v1664_v21 = vld [vmem:[%s2803_s0 + $0x68] sm:$0xff] }
 0x322   :  { %982 = vmatpush1.msra.mxu0 %v2929_v63  ;;  %1015 = vmatprep.mubr.f32.mxu0 %v2930_v4 }
 0x323   :  { %1053 = vmatpush1.msra.mxu1 %v2931_v15  ;;  %1086 = vmatprep.mubr.f32.mxu1 %v2930_v4  ;;  %v1665_v15 = vld [vmem:[%s2803_s0 + $0x70] sm:$0xff] }
 0x324   :  { %1122 = vmatprep.subr.mxu0 %v2932_v11  ;;  %1193 = vmatprep.subr.mxu1 %v2933_v2 }
 0x3c3   :  { %v846_v5 = vpop.f32.mrf.mxu0  ;;  %v917_v11 = vpop.f32.mrf.mxu1 }
 0x3c4   :  { %v922_v63 = vadd.f32 %v1663_v10, %v846_v5  ;;  %v924_v4 = vadd.f32 %v1665_v15, %v917_v11 }
 0x3c5   :  { %v848_v9 = vpop.f32.mrf.mxu0  ;;  %v919_v3 = vpop.f32.mrf.mxu1 }
 0x3c6   :  { %v926_v61 = vmul.f32 0.5, %v922_v63  ;;  %v923_v0 = vadd.f32 %v1664_v21, %v848_v9  ;;  %v925_v14 = vadd.f32 %v1666_v6, %v919_v3  ;;  %v2938_v6 = vld [vmem:[#allocation17_spill] sm:$0xff] }
 0x3c8   :  { %1719 = vtanh.f32 %v926_v61  ;;  %v930_v2 = vmul.f32 0.5, %v923_v0  ;;  %v935_v5 = vmul.f32 0.5, %v925_v14 }
 0x3ca   :  { %1721 = vtanh.f32 %v930_v2 }
 0x3cb   :  { %1723 = vtanh.f32 %v924_v4 }
 0x3cc   :  { %1725 = vtanh.f32 %v935_v5  ;;  %v2939_v5 = vld [vmem:[#allocation19_spill] sm:$0xff] }
 0x3d5   :  { %v1720_v10 = vpop.eup %1719 }
 0x3d6   :  { %v928_v63 = vmul.f32 0.5, %v1720_v10  ;;  %v2940_v10 = vld [vmem:[#allocation16_spill] sm:$0xff] }
 0x3d7   :  { %v1722_v9 = vpop.eup %1721 }
 0x3d8   :  { %v929_v21 = vadd.f32 0.5, %v928_v63  ;;  %v932_v13 = vmul.f32 0.5, %v1722_v9  ;;  %v1724_v1 = vpop.eup %1723  ;;  %v2941_v63 = vld [vmem:[#allocation18_spill] sm:$0xff]  ;;  %v2942_v9 = vld [vmem:[#allocation13_spill] sm:$0xff] }
 0x3d9   :  { %v1726_v61 = vpop.eup %1725 }
 0x3da   :  { %v933_v7 = vadd.f32 0.5, %v932_v13  ;;  %v940_v11 = vmul.f32 %v1724_v1, %v929_v21  ;;  %v937_v15 = vmul.f32 0.5, %v1726_v61  ;;  %v2935_v1 = vld [vmem:[#allocation23_spill] sm:$0xff]  ;;  %v2937_v13 = vld [vmem:[#allocation22_spill] sm:$0xff]  ;;  %v2946_v61 = vld [vmem:[#allocation9_spill] sm:$0xff] }
 0x3db   :  { %v2943_v21 = vld [vmem:[#allocation15_spill] sm:$0xff] }
 0x3dc   :  { %v939_v0 = vmul.f32 %v933_v7, %v2444_v8  ;;  %v938_v4 = vadd.f32 0.5, %v937_v15  ;;  %v2934_v8 = vld [vmem:[#allocation21_spill] sm:$0xff]  ;;  %v2936_v7 = vld [vmem:[#allocation20_spill] sm:$0xff]  ;;  %v2947_v15 = vld [vmem:[#allocation11_spill] sm:$0xff] }
 0x3de   :  { %v2529_v2 = vadd.f32 %v940_v11, %v939_v0  ;;  %v2944_v0 = vld [vmem:[#allocation12_spill] sm:$0xff]  ;;  %v2945_v11 = vld [vmem:[#allocation14_spill] sm:$0xff] }
 0x3e0   :  { %1727 = vtanh.f32 %v2529_v2 }
 0x3ed   :  { %v1728_v3 = vpop.eup %1727 }
 0x3ee   :  { %v943_v14 = vmul.f32 %v1728_v3, %v938_v4  ;;  %v2948_v4 = vld [vmem:[#allocation8_spill] sm:$0xff]  ;;  %v2949_v3 = vmov 0.0  }
 0x3f0   :  { %1667 = vst [vmem:[%s2807_s4 + $0x18] sm:$0xff] %v943_v14  ;;  %1016 = vmatmul.mubr.f32.vlgmr.msra.gmra.mxu0 %v943_v14  ;;  %1087 = vmatmul.mubr.f32.vlgmr.msra.gmra.mxu1 %v943_v14  ;;  %v2950_v14 = vld [vmem:[#allocation10_spill] sm:$0xff] }
 0x3f1   :  { %1123 = vmatpush1.msra.mxu0 %v2105_v60  ;;  %1194 = vmatpush1.msra.mxu1 %v2115_v62 }
 0x3f2   :  { %1124 = vmatprep.subr.mxu0 %v2090_v57  ;;  %1195 = vmatprep.subr.mxu1 %v2100_v59 }
 0x3f3   :  { %1125 = vmatpush1.msra.mxu0 %v2085_v56  ;;  %1196 = vmatpush1.msra.mxu1 %v2095_v58 }
 0x3f4   :  { %1126 = vmatprep.subr.mxu0 %v2070_v53  ;;  %1197 = vmatprep.subr.mxu1 %v2080_v55 }
 0x3f5   :  { %1127 = vmatpush1.msra.mxu0 %v2065_v52  ;;  %1198 = vmatpush1.msra.mxu1 %v2075_v54 }
 0x3f6   :  { %1128 = vmatprep.subr.mxu0 %v2050_v49  ;;  %1199 = vmatprep.subr.mxu1 %v2060_v51 }
 0x3f7   :  { %1129 = vmatpush1.msra.mxu0 %v2045_v48  ;;  %1200 = vmatpush1.msra.mxu1 %v2055_v50 }
 0x3f8   :  { %1130 = vmatprep.subr.mxu0 %v2030_v45  ;;  %1201 = vmatprep.subr.mxu1 %v2040_v47 }
 0x3f9   :  { %1131 = vmatpush1.msra.mxu0 %v2025_v44  ;;  %1202 = vmatpush1.msra.mxu1 %v2035_v46 }
 0x3fa   :  { %1132 = vmatprep.subr.mxu0 %v2010_v41  ;;  %1203 = vmatprep.subr.mxu1 %v2020_v43 }
 0x3fb   :  { %1133 = vmatpush1.msra.mxu0 %v2005_v40  ;;  %1204 = vmatpush1.msra.mxu1 %v2015_v42 }
 0x3fc   :  { %1134 = vmatprep.subr.mxu0 %v1990_v37  ;;  %1205 = vmatprep.subr.mxu1 %v2000_v39 }
 0x3fd   :  { %1135 = vmatpush1.msra.mxu0 %v1985_v36  ;;  %1206 = vmatpush1.msra.mxu1 %v1995_v38 }
 0x3fe   :  { %1136 = vmatprep.subr.mxu0 %v1970_v33  ;;  %1207 = vmatprep.subr.mxu1 %v1980_v35 }
 0x3ff   :  { %1137 = vmatpush1.msra.mxu0 %v1965_v32  ;;  %1208 = vmatpush1.msra.mxu1 %v1975_v34 }
 0x400   :  { %1138 = vmatprep.subr.mxu0 %v1950_v29  ;;  %1209 = vmatprep.subr.mxu1 %v1960_v31 }
 0x401   :  { %1139 = vmatpush1.msra.mxu0 %v1945_v28  ;;  %1210 = vmatpush1.msra.mxu1 %v1955_v30 }
 0x402   :  { %1140 = vmatprep.subr.mxu0 %v1930_v25  ;;  %1211 = vmatprep.subr.mxu1 %v1940_v27 }
 0x403   :  { %1141 = vmatpush1.msra.mxu0 %v1925_v24  ;;  %1212 = vmatpush1.msra.mxu1 %v1935_v26 }
 0x404   :  { %1142 = vmatprep.subr.mxu0 %v2874_v12  ;;  %1213 = vmatprep.subr.mxu1 %v1920_v23 }
 0x405   :  { %1143 = vmatpush1.msra.mxu0 %v1905_v20  ;;  %1214 = vmatpush1.msra.mxu1 %v1915_v22 }
 0x406   :  { %1144 = vmatprep.subr.mxu0 %v1890_v17  ;;  %1215 = vmatprep.subr.mxu1 %v1900_v19 }
 0x407   :  { %1145 = vmatpush1.msra.mxu0 %v1885_v16  ;;  %1216 = vmatpush1.msra.mxu1 %v1895_v18 }
 0x408   :  { %1146 = vmatprep.subr.mxu0 %v2934_v8  ;;  %1217 = vmatprep.subr.mxu1 %v2935_v1 }
 0x409   :  { %1147 = vmatpush1.msra.mxu0 %v2936_v7  ;;  %1218 = vmatpush1.msra.mxu1 %v2937_v13 }
 0x40a   :  { %1148 = vmatprep.subr.mxu0 %v2938_v6  ;;  %1219 = vmatprep.subr.mxu1 %v2939_v5  ;;  %v1671_v5 = vld [vmem:[%s2803_s0 + $0x98] sm:$0xff] }
 0x40b   :  { %1149 = vmatpush1.msra.mxu0 %v2940_v10  ;;  %1220 = vmatpush1.msra.mxu1 %v2941_v63  ;;  %v2951_v63 = vld [vmem:[#allocation25_spill] sm:$0xff] }
 0x40c   :  { %1150 = vmatprep.subr.mxu0 %v2942_v9  ;;  %1221 = vmatprep.subr.mxu1 %v2943_v21  ;;  %v2952_v9 = vld [vmem:[#allocation26_spill] sm:$0xff] }
 0x40d   :  { %1151 = vmatpush1.msra.mxu0 %v2944_v0  ;;  %1222 = vmatpush1.msra.mxu1 %v2945_v11  ;;  %v1668_v11 = vld [vmem:[%s2803_s0 + $0x80] sm:$0xff] }
 0x40e   :  { %1152 = vmatprep.subr.mxu0 %v2946_v61  ;;  %1223 = vmatprep.subr.mxu1 %v2947_v15  ;;  %v1669_v15 = vld [vmem:[%s2803_s0 + $0x88] sm:$0xff] }
 0x40f   :  { %1153 = vmatpush1.msra.mxu0 %v2948_v4  ;;  %1186 = vmatprep.mubr.f32.mxu0 %v2949_v3 }
 0x410   :  { %1224 = vmatpush1.msra.mxu1 %v2950_v14  ;;  %1257 = vmatprep.mubr.f32.mxu1 %v2949_v3  ;;  %v1670_v14 = vld [vmem:[%s2803_s0 + $0x90] sm:$0xff] }
 0x411   :  { %1293 = vmatprep.subr.mxu0 %v2951_v63  ;;  %1364 = vmatprep.subr.mxu1 %v2952_v9 }
 0x4b0   :  { %v1017_v0 = vpop.f32.mrf.mxu0  ;;  %v1088_v63 = vpop.f32.mrf.mxu1 }
 0x4b1   :  { %v1093_v4 = vadd.f32 %v1668_v11, %v1017_v0  ;;  %v1095_v3 = vadd.f32 %v1670_v14, %v1088_v63 }
 0x4b2   :  { %v1019_v61 = vpop.f32.mrf.mxu0  ;;  %v1090_v6 = vpop.f32.mrf.mxu1 }
 0x4b3   :  { %v1097_v21 = vmul.f32 0.5, %v1093_v4  ;;  %v1094_v10 = vadd.f32 %v1669_v15, %v1019_v61  ;;  %v1096_v13 = vadd.f32 %v1671_v5, %v1090_v6  ;;  %v2957_v5 = vld [vmem:[#allocation17_spill] sm:$0xff] }
 0x4b5   :  { %1729 = vtanh.f32 %v1097_v21  ;;  %v1101_v9 = vmul.f32 0.5, %v1094_v10  ;;  %v1106_v0 = vmul.f32 0.5, %v1096_v13 }
 0x4b7   :  { %1731 = vtanh.f32 %v1101_v9 }
 0x4b8   :  { %1733 = vtanh.f32 %v1095_v3 }
 0x4b9   :  { %1735 = vtanh.f32 %v1106_v0  ;;  %v2958_v0 = vld [vmem:[#allocation19_spill] sm:$0xff] }
 0x4c2   :  { %v1730_v11 = vpop.eup %1729 }
 0x4c3   :  { %v1099_v4 = vmul.f32 0.5, %v1730_v11  ;;  %v2959_v11 = vld [vmem:[#allocation16_spill] sm:$0xff] }
 0x4c4   :  { %v1732_v61 = vpop.eup %1731 }
 0x4c5   :  { %v1100_v15 = vadd.f32 0.5, %v1099_v4  ;;  %v1103_v7 = vmul.f32 0.5, %v1732_v61  ;;  %v1734_v8 = vpop.eup %1733  ;;  %v2960_v4 = vld [vmem:[#allocation18_spill] sm:$0xff]  ;;  %v2961_v61 = vld [vmem:[#allocation13_spill] sm:$0xff] }
 0x4c6   :  { %v1736_v21 = vpop.eup %1735 }
 0x4c7   :  { %v1104_v1 = vadd.f32 0.5, %v1103_v7  ;;  %v1111_v63 = vmul.f32 %v1734_v8, %v1100_v15  ;;  %v1108_v14 = vmul.f32 0.5, %v1736_v21  ;;  %v2954_v8 = vld [vmem:[#allocation23_spill] sm:$0xff]  ;;  %v2956_v7 = vld [vmem:[#allocation22_spill] sm:$0xff]  ;;  %v2965_v21 = vld [vmem:[#allocation9_spill] sm:$0xff] }
 0x4c8   :  { %v2962_v15 = vld [vmem:[#allocation15_spill] sm:$0xff] }
 0x4c9   :  { %v1110_v10 = vmul.f32 %v1104_v1, %v2529_v2  ;;  %v1109_v3 = vadd.f32 0.5, %v1108_v14  ;;  %v2953_v2 = vld [vmem:[#allocation21_spill] sm:$0xff]  ;;  %v2955_v1 = vld [vmem:[#allocation20_spill] sm:$0xff]  ;;  %v2966_v14 = vld [vmem:[#allocation11_spill] sm:$0xff] }
 0x4cb   :  { %v2614_v9 = vadd.f32 %v1111_v63, %v1110_v10  ;;  %v2963_v10 = vld [vmem:[#allocation12_spill] sm:$0xff]  ;;  %v2964_v63 = vld [vmem:[#allocation14_spill] sm:$0xff] }
 0x4cd   :  { %1737 = vtanh.f32 %v2614_v9 }
 0x4da   :  { %v1738_v6 = vpop.eup %1737 }
 0x4db   :  { %v1114_v13 = vmul.f32 %v1738_v6, %v1109_v3  ;;  %v2967_v3 = vld [vmem:[#allocation8_spill] sm:$0xff]  ;;  %v2968_v6 = vmov 0.0  }
 0x4dd   :  { %1672 = vst [vmem:[%s2807_s4 + $0x20] sm:$0xff] %v1114_v13  ;;  %1187 = vmatmul.mubr.f32.vlgmr.msra.gmra.mxu0 %v1114_v13  ;;  %1258 = vmatmul.mubr.f32.vlgmr.msra.gmra.mxu1 %v1114_v13  ;;  %v2969_v13 = vld [vmem:[#allocation10_spill] sm:$0xff] }
 0x4de   :  { %1294 = vmatpush1.msra.mxu0 %v2105_v60  ;;  %1365 = vmatpush1.msra.mxu1 %v2115_v62 }
 0x4df   :  { %1295 = vmatprep.subr.mxu0 %v2090_v57  ;;  %1366 = vmatprep.subr.mxu1 %v2100_v59 }
 0x4e0   :  { %1296 = vmatpush1.msra.mxu0 %v2085_v56  ;;  %1367 = vmatpush1.msra.mxu1 %v2095_v58 }
 0x4e1   :  { %1297 = vmatprep.subr.mxu0 %v2070_v53  ;;  %1368 = vmatprep.subr.mxu1 %v2080_v55 }
 0x4e2   :  { %1298 = vmatpush1.msra.mxu0 %v2065_v52  ;;  %1369 = vmatpush1.msra.mxu1 %v2075_v54 }
 0x4e3   :  { %1299 = vmatprep.subr.mxu0 %v2050_v49  ;;  %1370 = vmatprep.subr.mxu1 %v2060_v51 }
 0x4e4   :  { %1300 = vmatpush1.msra.mxu0 %v2045_v48  ;;  %1371 = vmatpush1.msra.mxu1 %v2055_v50 }
 0x4e5   :  { %1301 = vmatprep.subr.mxu0 %v2030_v45  ;;  %1372 = vmatprep.subr.mxu1 %v2040_v47 }
 0x4e6   :  { %1302 = vmatpush1.msra.mxu0 %v2025_v44  ;;  %1373 = vmatpush1.msra.mxu1 %v2035_v46 }
 0x4e7   :  { %1303 = vmatprep.subr.mxu0 %v2010_v41  ;;  %1374 = vmatprep.subr.mxu1 %v2020_v43 }
 0x4e8   :  { %1304 = vmatpush1.msra.mxu0 %v2005_v40  ;;  %1375 = vmatpush1.msra.mxu1 %v2015_v42 }
 0x4e9   :  { %1305 = vmatprep.subr.mxu0 %v1990_v37  ;;  %1376 = vmatprep.subr.mxu1 %v2000_v39 }
 0x4ea   :  { %1306 = vmatpush1.msra.mxu0 %v1985_v36  ;;  %1377 = vmatpush1.msra.mxu1 %v1995_v38 }
 0x4eb   :  { %1307 = vmatprep.subr.mxu0 %v1970_v33  ;;  %1378 = vmatprep.subr.mxu1 %v1980_v35 }
 0x4ec   :  { %1308 = vmatpush1.msra.mxu0 %v1965_v32  ;;  %1379 = vmatpush1.msra.mxu1 %v1975_v34 }
 0x4ed   :  { %1309 = vmatprep.subr.mxu0 %v1950_v29  ;;  %1380 = vmatprep.subr.mxu1 %v1960_v31 }
 0x4ee   :  { %1310 = vmatpush1.msra.mxu0 %v1945_v28  ;;  %1381 = vmatpush1.msra.mxu1 %v1955_v30 }
 0x4ef   :  { %1311 = vmatprep.subr.mxu0 %v1930_v25  ;;  %1382 = vmatprep.subr.mxu1 %v1940_v27 }
 0x4f0   :  { %1312 = vmatpush1.msra.mxu0 %v1925_v24  ;;  %1383 = vmatpush1.msra.mxu1 %v1935_v26 }
 0x4f1   :  { %1313 = vmatprep.subr.mxu0 %v2874_v12  ;;  %1384 = vmatprep.subr.mxu1 %v1920_v23 }
 0x4f2   :  { %1314 = vmatpush1.msra.mxu0 %v1905_v20  ;;  %1385 = vmatpush1.msra.mxu1 %v1915_v22 }
 0x4f3   :  { %1315 = vmatprep.subr.mxu0 %v1890_v17  ;;  %1386 = vmatprep.subr.mxu1 %v1900_v19 }
 0x4f4   :  { %1316 = vmatpush1.msra.mxu0 %v1885_v16  ;;  %1387 = vmatpush1.msra.mxu1 %v1895_v18 }
 0x4f5   :  { %1317 = vmatprep.subr.mxu0 %v2953_v2  ;;  %1388 = vmatprep.subr.mxu1 %v2954_v8 }
 0x4f6   :  { %1318 = vmatpush1.msra.mxu0 %v2955_v1  ;;  %1389 = vmatpush1.msra.mxu1 %v2956_v7 }
 0x4f7   :  { %1319 = vmatprep.subr.mxu0 %v2957_v5  ;;  %1390 = vmatprep.subr.mxu1 %v2958_v0  ;;  %v1676_v0 = vld [vmem:[%s2803_s0 + $0xb8] sm:$0xff] }
 0x4f8   :  { %1320 = vmatpush1.msra.mxu0 %v2959_v11  ;;  %1391 = vmatpush1.msra.mxu1 %v2960_v4  ;;  %v2970_v4 = vld [vmem:[#allocation25_spill] sm:$0xff] }
 0x4f9   :  { %1321 = vmatprep.subr.mxu0 %v2961_v61  ;;  %1392 = vmatprep.subr.mxu1 %v2962_v15  ;;  %v2971_v61 = vld [vmem:[#allocation26_spill] sm:$0xff] }
 0x4fa   :  { %1322 = vmatpush1.msra.mxu0 %v2963_v10  ;;  %1393 = vmatpush1.msra.mxu1 %v2964_v63  ;;  %v1673_v63 = vld [vmem:[%s2803_s0 + $0xa0] sm:$0xff] }
 0x4fb   :  { %1323 = vmatprep.subr.mxu0 %v2965_v21  ;;  %1394 = vmatprep.subr.mxu1 %v2966_v14  ;;  %v1674_v14 = vld [vmem:[%s2803_s0 + $0xa8] sm:$0xff] }
 0x4fc   :  { %1324 = vmatpush1.msra.mxu0 %v2967_v3  ;;  %1357 = vmatprep.mubr.f32.mxu0 %v2968_v6 }
 0x4fd   :  { %1395 = vmatpush1.msra.mxu1 %v2969_v13  ;;  %1428 = vmatprep.mubr.f32.mxu1 %v2968_v6  ;;  %v1675_v13 = vld [vmem:[%s2803_s0 + $0xb0] sm:$0xff] }
 0x4fe   :  { %1464 = vmatprep.subr.mxu0 %v2970_v4  ;;  %1535 = vmatprep.subr.mxu1 %v2971_v61 }
 0x59d   :  { %v1188_v10 = vpop.f32.mrf.mxu0  ;;  %v1259_v4 = vpop.f32.mrf.mxu1 }
 0x59e   :  { %v1264_v3 = vadd.f32 %v1673_v63, %v1188_v10  ;;  %v1266_v6 = vadd.f32 %v1675_v13, %v1259_v4 }
 0x59f   :  { %v1190_v21 = vpop.f32.mrf.mxu0  ;;  %v1261_v5 = vpop.f32.mrf.mxu1 }
 0x5a0   :  { %v1268_v15 = vmul.f32 0.5, %v1264_v3  ;;  %v1265_v11 = vadd.f32 %v1674_v14, %v1190_v21  ;;  %v1267_v7 = vadd.f32 %v1676_v0, %v1261_v5 }
 0x5a2   :  { %1739 = vtanh.f32 %v1268_v15  ;;  %v1272_v61 = vmul.f32 0.5, %v1265_v11  ;;  %v1277_v10 = vmul.f32 0.5, %v1267_v7 }
 0x5a4   :  { %1741 = vtanh.f32 %v1272_v61 }
 0x5a5   :  { %1743 = vtanh.f32 %v1266_v6 }
 0x5a6   :  { %1745 = vtanh.f32 %v1277_v10 }
 0x5af   :  { %v1740_v63 = vpop.eup %1739 }
 0x5b0   :  { %v1270_v3 = vmul.f32 0.5, %v1740_v63 }
 0x5b1   :  { %v1742_v21 = vpop.eup %1741 }
 0x5b2   :  { %v1271_v14 = vadd.f32 0.5, %v1270_v3  ;;  %v1274_v1 = vmul.f32 0.5, %v1742_v21  ;;  %v1744_v2 = vpop.eup %1743  ;;  %v1685_v21 = vld [vmem:[%s2803_s0 + $0xf0] sm:$0xff] }
 0x5b3   :  { %v1746_v4 = vpop.eup %1745 }
 0x5b4   :  { %v1275_v8 = vadd.f32 0.5, %v1274_v1  ;;  %v1282_v15 = vmul.f32 %v1744_v2, %v1271_v14  ;;  %v1279_v61 = vmul.f32 0.5, %v1746_v4  ;;  %v1683_v2 = vld [vmem:[%s2803_s0 + $0xe0] sm:$0xff]  ;;  %v1684_v1 = vld [vmem:[%s2803_s0 + $0xe8] sm:$0xff] }
 0x5b6   :  { %v1281_v11 = vmul.f32 %v1275_v8, %v2614_v9  ;;  %v1280_v6 = vadd.f32 0.5, %v1279_v61 }
 0x5b8   :  { %v2699_v13 = vadd.f32 %v1282_v15, %v1281_v11 }
 0x5ba   :  { %1747 = vtanh.f32 %v2699_v13 }
 0x5c7   :  { %v1748_v5 = vpop.eup %1747 }
 0x5c8   :  { %v1285_v7 = vmul.f32 %v1748_v5, %v1280_v6 }
 0x5ca   :  { %1677 = vst [vmem:[%s2807_s4 + $0x28] sm:$0xff] %v1285_v7  ;;  %1358 = vmatmul.mubr.f32.vlgmr.msra.gmra.mxu0 %v1285_v7  ;;  %1429 = vmatmul.mubr.f32.vlgmr.msra.gmra.mxu1 %v1285_v7 }
 0x5cb   :  { %1465 = vmatpush1.msra.mxu0 %v2105_v60  ;;  %1536 = vmatpush1.msra.mxu1 %v2115_v62 }
 0x5cc   :  { %1466 = vmatprep.subr.mxu0 %v2090_v57  ;;  %1537 = vmatprep.subr.mxu1 %v2100_v59 }
 0x5cd   :  { %1467 = vmatpush1.msra.mxu0 %v2085_v56  ;;  %1538 = vmatpush1.msra.mxu1 %v2095_v58 }
 0x5ce   :  { %1468 = vmatprep.subr.mxu0 %v2070_v53  ;;  %1539 = vmatprep.subr.mxu1 %v2080_v55 }
 0x5cf   :  { %1469 = vmatpush1.msra.mxu0 %v2065_v52  ;;  %1540 = vmatpush1.msra.mxu1 %v2075_v54 }
 0x5d0   :  { %1470 = vmatprep.subr.mxu0 %v2050_v49  ;;  %1541 = vmatprep.subr.mxu1 %v2060_v51 }
 0x5d1   :  { %1471 = vmatpush1.msra.mxu0 %v2045_v48  ;;  %1542 = vmatpush1.msra.mxu1 %v2055_v50 }
 0x5d2   :  { %1472 = vmatprep.subr.mxu0 %v2030_v45  ;;  %1543 = vmatprep.subr.mxu1 %v2040_v47  ;;  %v1681_v45 = vld [vmem:[%s2803_s0 + $0xd8] sm:$0xff] }
 0x5d3   :  { %1473 = vmatpush1.msra.mxu0 %v2025_v44  ;;  %1544 = vmatpush1.msra.mxu1 %v2035_v46 }
 0x5d4   :  { %1474 = vmatprep.subr.mxu0 %v2010_v41  ;;  %1545 = vmatprep.subr.mxu1 %v2020_v43  ;;  %v1680_v41 = vld [vmem:[%s2803_s0 + $0xd0] sm:$0xff] }
 0x5d5   :  { %1475 = vmatpush1.msra.mxu0 %v2005_v40  ;;  %1546 = vmatpush1.msra.mxu1 %v2015_v42 }
 0x5d6   :  { %1476 = vmatprep.subr.mxu0 %v1990_v37  ;;  %1547 = vmatprep.subr.mxu1 %v2000_v39 }
 0x5d7   :  { %1477 = vmatpush1.msra.mxu0 %v1985_v36  ;;  %1548 = vmatpush1.msra.mxu1 %v1995_v38  ;;  %v1679_v36 = vld [vmem:[%s2803_s0 + $0xc8] sm:$0xff] }
 0x5d8   :  { %1478 = vmatprep.subr.mxu0 %v1970_v33  ;;  %1549 = vmatprep.subr.mxu1 %v1980_v35  ;;  %v2988_v33 = vld [vmem:[#allocation10_spill] sm:$0xff] }
 0x5d9   :  { %1479 = vmatpush1.msra.mxu0 %v1965_v32  ;;  %1550 = vmatpush1.msra.mxu1 %v1975_v34  ;;  %v2987_v32 = vmov 0.0   ;;  %v1678_v34 = vld [vmem:[%s2803_s0 + $0xc0] sm:$0xff] }
 0x5da   :  { %1480 = vmatprep.subr.mxu0 %v1950_v29  ;;  %1551 = vmatprep.subr.mxu1 %v1960_v31  ;;  %v2984_v29 = vld [vmem:[#allocation9_spill] sm:$0xff]  ;;  %v2986_v31 = vld [vmem:[#allocation8_spill] sm:$0xff] }
 0x5db   :  { %1481 = vmatpush1.msra.mxu0 %v1945_v28  ;;  %1552 = vmatpush1.msra.mxu1 %v1955_v30  ;;  %v2983_v28 = vld [vmem:[#allocation14_spill] sm:$0xff]  ;;  %v2985_v30 = vld [vmem:[#allocation11_spill] sm:$0xff] }
 0x5dc   :  { %1482 = vmatprep.subr.mxu0 %v1930_v25  ;;  %1553 = vmatprep.subr.mxu1 %v1940_v27  ;;  %v2972_v25 = vld [vmem:[#allocation21_spill] sm:$0xff]  ;;  %v2975_v27 = vld [vmem:[#allocation22_spill] sm:$0xff] }
 0x5dd   :  { %1483 = vmatpush1.msra.mxu0 %v1925_v24  ;;  %1554 = vmatpush1.msra.mxu1 %v1935_v26  ;;  %v2973_v24 = vld [vmem:[#allocation23_spill] sm:$0xff]  ;;  %v2974_v26 = vld [vmem:[#allocation20_spill] sm:$0xff] }
 0x5de   :  { %1484 = vmatprep.subr.mxu0 %v2874_v12  ;;  %1555 = vmatprep.subr.mxu1 %v1920_v23  ;;  %v2976_v23 = vld [vmem:[#allocation17_spill] sm:$0xff] }
 0x5df   :  { %1485 = vmatpush1.msra.mxu0 %v1905_v20  ;;  %1556 = vmatpush1.msra.mxu1 %v1915_v22  ;;  %v2977_v20 = vld [vmem:[#allocation19_spill] sm:$0xff]  ;;  %v2978_v22 = vld [vmem:[#allocation16_spill] sm:$0xff] }
 0x5e0   :  { %1486 = vmatprep.subr.mxu0 %v1890_v17  ;;  %1557 = vmatprep.subr.mxu1 %v1900_v19  ;;  %v2979_v17 = vld [vmem:[#allocation18_spill] sm:$0xff]  ;;  %v2980_v19 = vld [vmem:[#allocation13_spill] sm:$0xff] }
 0x5e1   :  { %1487 = vmatpush1.msra.mxu0 %v1885_v16  ;;  %1558 = vmatpush1.msra.mxu1 %v1895_v18  ;;  %v2981_v16 = vld [vmem:[#allocation15_spill] sm:$0xff]  ;;  %v2982_v18 = vld [vmem:[#allocation12_spill] sm:$0xff] }
 0x5e2   :  { %1488 = vmatprep.subr.mxu0 %v2972_v25  ;;  %1559 = vmatprep.subr.mxu1 %v2973_v24 }
 0x5e3   :  { %1489 = vmatpush1.msra.mxu0 %v2974_v26  ;;  %1560 = vmatpush1.msra.mxu1 %v2975_v27 }
 0x5e4   :  { %1490 = vmatprep.subr.mxu0 %v2976_v23  ;;  %1561 = vmatprep.subr.mxu1 %v2977_v20 }
 0x5e5   :  { %1491 = vmatpush1.msra.mxu0 %v2978_v22  ;;  %1562 = vmatpush1.msra.mxu1 %v2979_v17 }
 0x5e6   :  { %1492 = vmatprep.subr.mxu0 %v2980_v19  ;;  %1563 = vmatprep.subr.mxu1 %v2981_v16 }
 0x5e7   :  { %1493 = vmatpush1.msra.mxu0 %v2982_v18  ;;  %1564 = vmatpush1.msra.mxu1 %v2983_v28 }
 0x5e8   :  { %1494 = vmatprep.subr.mxu0 %v2984_v29  ;;  %1565 = vmatprep.subr.mxu1 %v2985_v30 }
 0x5e9   :  { %1495 = vmatpush1.msra.mxu0 %v2986_v31  ;;  %1528 = vmatprep.mubr.f32.mxu0 %v2987_v32 }
 0x5ea   :  { %1566 = vmatpush1.msra.mxu1 %v2988_v33  ;;  %1599 = vmatprep.mubr.f32.mxu1 %v2987_v32 }
 0x68a   :  { %v1359_v35 = vpop.f32.mrf.mxu0  ;;  %v1430_v42 = vpop.f32.mrf.mxu1 }
 0x68b   :  { %v1435_v37 = vadd.f32 %v1678_v34, %v1359_v35  ;;  %v1437_v44 = vadd.f32 %v1680_v41, %v1430_v42 }
 0x68c   :  { %v1361_v38 = vpop.f32.mrf.mxu0  ;;  %v1432_v46 = vpop.f32.mrf.mxu1 }
 0x68d   :  { %v1439_v39 = vmul.f32 0.5, %v1435_v37  ;;  %v1436_v40 = vadd.f32 %v1679_v36, %v1361_v38  ;;  %v1438_v47 = vadd.f32 %v1681_v45, %v1432_v46 }
 0x68f   :  { %1749 = vtanh.f32 %v1439_v39  ;;  %v1443_v43 = vmul.f32 0.5, %v1436_v40  ;;  %v1448_v48 = vmul.f32 0.5, %v1438_v47 }
 0x691   :  { %1751 = vtanh.f32 %v1443_v43 }
 0x692   :  { %1753 = vtanh.f32 %v1437_v44 }
 0x693   :  { %1755 = vtanh.f32 %v1448_v48 }
 0x69c   :  { %v1750_v49 = vpop.eup %1749 }
 0x69d   :  { %v1441_v50 = vmul.f32 0.5, %v1750_v49 }
 0x69e   :  { %v1752_v51 = vpop.eup %1751 }
 0x69f   :  { %v1442_v52 = vadd.f32 0.5, %v1441_v50  ;;  %v1445_v53 = vmul.f32 0.5, %v1752_v51  ;;  %v1754_v55 = vpop.eup %1753 }
 0x6a0   :  { %v1756_v59 = vpop.eup %1755 }
 0x6a1   :  { %v1446_v54 = vadd.f32 0.5, %v1445_v53  ;;  %v1453_v57 = vmul.f32 %v1754_v55, %v1442_v52  ;;  %v1450_v60 = vmul.f32 0.5, %v1756_v59 }
 0x6a3   :  { %v1452_v56 = vmul.f32 %v1446_v54, %v2699_v13  ;;  %v1451_v62 = vadd.f32 0.5, %v1450_v60  ;;  %v1686_v13 = vld [vmem:[%s2803_s0 + $0xf8] sm:$0xff] }
 0x6a5   :  { %v1454_v58 = vadd.f32 %v1453_v57, %v1452_v56 }
 0x6a7   :  { %1757 = vtanh.f32 %v1454_v58 }
 0x6b4   :  { %v1758_v12 = vpop.eup %1757 }
 0x6b5   :  { %v1456_v9 = vmul.f32 %v1758_v12, %v1451_v62 }
 0x6b7   :  { %1682 = vst [vmem:[%s2807_s4 + $0x30] sm:$0xff] %v1456_v9  ;;  %1529 = vmatmul.mubr.f32.vlgmr.msra.gmra.mxu0 %v1456_v9  ;;  %1600 = vmatmul.mubr.f32.vlgmr.msra.gmra.mxu1 %v1456_v9 }
 0x777   :  { %v1530_v8 = vpop.f32.mrf.mxu0  ;;  %v1601_v14 = vpop.f32.mrf.mxu1 }
 0x778   :  { %v1606_v0 = vadd.f32 %v1683_v2, %v1530_v8  ;;  %v1608_v15 = vadd.f32 %v1685_v21, %v1601_v14 }
 0x779   :  { %v1532_v10 = vpop.f32.mrf.mxu0  ;;  %v1603_v4 = vpop.f32.mrf.mxu1 }
 0x77a   :  { %v1610_v63 = vmul.f32 0.5, %v1606_v0  ;;  %v1607_v3 = vadd.f32 %v1684_v1, %v1532_v10  ;;  %v1609_v61 = vadd.f32 %v1686_v13, %v1603_v4 }
 0x77c   :  { %1759 = vtanh.f32 %v1610_v63  ;;  %v1614_v11 = vmul.f32 0.5, %v1607_v3  ;;  %v1619_v6 = vmul.f32 0.5, %v1609_v61 }
 0x77e   :  { %1761 = vtanh.f32 %v1614_v11 }
 0x77f   :  { %1763 = vtanh.f32 %v1608_v15 }
 0x780   :  { %1765 = vtanh.f32 %v1619_v6 }
 0x789   :  { %v1760_v5 = vpop.eup %1759 }
 0x78a   :  { %v1612_v7 = vmul.f32 0.5, %v1760_v5 }
 0x78b   :  { %v1762_v25 = vpop.eup %1761 }
 0x78c   :  { %v1613_v24 = vadd.f32 0.5, %v1612_v7  ;;  %v1616_v26 = vmul.f32 0.5, %v1762_v25  ;;  %v1764_v23 = vpop.eup %1763 }
 0x78d   :  { %v1766_v19 = vpop.eup %1765 }
 0x78e   :  { %v1617_v27 = vadd.f32 0.5, %v1616_v26  ;;  %v1624_v22 = vmul.f32 %v1764_v23, %v1613_v24  ;;  %v1621_v16 = vmul.f32 0.5, %v1766_v19 }
 0x790   :  { %v1623_v20 = vmul.f32 %v1617_v27, %v1454_v58  ;;  %v1622_v18 = vadd.f32 0.5, %v1621_v16 }
 0x792   :  { %v1625_v17 = vadd.f32 %v1624_v22, %v1623_v20 }
 0x794   :  { %1767 = vtanh.f32 %v1625_v17  ;;  %1636 = vst [vmem:[%s2808_s5] sm:$0xff] %v1625_v17 }
 0x7a1   :  { %v1768_v28 = vpop.eup %1767 }
 0x7a2   :  { %v1627_v29 = vmul.f32 %v1768_v28, %v1622_v18 }
 0x7a4   :  { %1687 = vst [vmem:[%s2807_s4 + $0x38] sm:$0xff] %v1627_v29 }

</bundles_post_ra>
